<compile_context>
chip_gen: v7x
topology: tpu7x:2x2x1
jax: 0.10.0
libtpu: 0.0.40
codegen_flags: <defaults>
</compile_context>

<pallas_src>
import functools
import math

import numpy as np
import jax
import jax.numpy as jnp
from jax import lax
from jax.experimental import pallas as pl
from jax.experimental.pallas import tpu as pltpu


# ----------------------- Clenshaw-Curtis quadrature (UMNN) -------------------
def compute_cc_weights(nb_steps):
    """Replicates UMNN's compute_cc_weights (NeuralIntegral.py)."""
    lam = np.arange(0, nb_steps + 1, 1).reshape(-1, 1)
    lam = np.cos((lam @ lam.T) * math.pi / nb_steps)
    lam[:, 0] = 0.5
    lam[:, -1] = 0.5 * lam[:, -1]
    lam = lam * 2.0 / nb_steps
    W = np.arange(0, nb_steps + 1, 1).reshape(-1, 1)
    W[np.arange(1, nb_steps + 1, 2)] = 0
    W = 2.0 / (1 - W ** 2)
    W[0] = 1
    W[np.arange(1, nb_steps + 1, 2)] = 0
    cc_weights = (lam.T @ W).astype(np.float32).reshape(-1)       # (K,)
    steps = np.cos(np.arange(0, nb_steps + 1).reshape(-1)
                   * math.pi / nb_steps).astype(np.float32)       # (K,)
    return cc_weights, steps


# ------------------------------ Pallas kernel --------------------------------
def _partial_embedding_kernel(
    s_row_ref, w_row_ref,                     # VMEM (K*tb, 1) f32: CC node / (0.5*weight) per row
    xm_ref, xnm_ref,                          # VMEM (tb, d_mono), (tb, d_emb_in)
    we0, be0, we1, be1, we2, be2, we3, be3, we4, be4,   # embedding MLP params
    wu0x, wu0h, bu0, wu1, bu1, wu2, bu2, wuo, buo,      # UMNN integrand MLP params
    o_ref,                                    # VMEM (1, tb): lane-dense output
):
    f32 = jnp.float32
    cd = xm_ref.dtype                         # MXU input dtype (f32 or bf16)
    relu = lambda v: jnp.maximum(v, 0.0)
    dot = functools.partial(jnp.dot, preferred_element_type=f32)

    tb = xm_ref.shape[0]
    K = s_row_ref.shape[0] // tb              # nb_steps + 1 (static)
    d_mono = xm_ref.shape[1]

    # ---- embedding_net: 5x (Linear -> ReLU), f32 accumulation ---------------
    h = relu(dot(xnm_ref[...], we0[...]) + be0[...])
    h = relu(dot(h.astype(cd), we1[...]) + be1[...])
    h = relu(dot(h.astype(cd), we2[...]) + be2[...])
    h = relu(dot(h.astype(cd), we3[...]) + be3[...])
    h = relu(dot(h.astype(cd), we4[...]) + be4[...])            # (tb, out_embedding)

    # ---- UMNN (SlowDMonotonicNN), node-batched Clenshaw-Curtis --------------
    # F(x, h) = sum_i x_i * \int_0^1 g_i(t*x, h) dt,  g = ELU(MLP) + 1 > 0.
    # Loop-invariant hoists: conditioning term hc, and xw = xm @ Wx (the node
    # value s is a scalar, so (s*xm) @ Wx == s * (xm @ Wx)).
    xm_f32 = xm_ref[...].astype(f32)
    hc = dot(h.astype(cd), wu0h[...]) + bu0[...]                # (tb, Hm)
    xw = dot(xm_ref[...], wu0x[...])                            # (tb, Hm)

    # Batch all K quadrature nodes into one big-M matmul per layer (M = K*tb).
    xw_rep = jnp.tile(xw, (K, 1))                               # (K*tb, Hm)
    hc_rep = jnp.tile(hc, (K, 1))                               # (K*tb, Hm)
    a = relu(s_row_ref[...] * xw_rep + hc_rep)                  # (K*tb, Hm)
    a = relu(dot(a.astype(cd), wu1[...]) + bu1[...])
    a = relu(dot(a.astype(cd), wu2[...]) + bu2[...])
    g = dot(a.astype(cd), wuo[...]) + buo[...]                  # (K*tb, d_mono)
    g = jnp.where(g > 0.0, g + 1.0, jnp.exp(g))                 # ELU(g) + 1

    # Clenshaw-Curtis weighted reduction over the node axis (0.5 factor folded
    # into w_row on the host).
    gw = g * w_row_ref[...]                                     # (K*tb, d_mono)
    acc = jnp.sum(gw.reshape(K, tb, d_mono), axis=0)            # (tb, d_mono)
    integral = acc * xm_f32                                     # per-dim \int_0^{x_i}
    f = jnp.sum(integral, axis=-1, keepdims=True)               # (tb, 1); n_out = 1

    # Lane-dense output: move the per-row scalar from sublanes to lanes with a
    # (sublane == lane) mask + sublane reduce (avoids a narrow transpose).
    row = lax.broadcasted_iota(jnp.int32, (tb, tb), 0)
    col = lax.broadcasted_iota(jnp.int32, (tb, tb), 1)
    f_row = jnp.sum(jnp.where(row == col, f, 0.0), axis=0, keepdims=True)   # (1, tb)

    # sigmoid -> nan_to_num (sigmoid is bounded, so nan_to_num's +/-inf clamp
    # is a no-op); dropout(p=0.0) is the identity.  approx=False keeps the
    # f32 reference tolerance; the single divide is negligible either way.
    y = pl.reciprocal(1.0 + jnp.exp(-f_row), approx=False)
    y = jnp.where(jnp.isnan(y), 0.0, y)
    o_ref[...] = y


# ------------------------------ helpers --------------------------------------
def _round_up(x, m):
    return ((x + m - 1) // m) * m


def _pad_cols(a, n):
    return jnp.pad(a, ((0, 0), (0, n - a.shape[1])))


def _pad_rows(a, n):
    return jnp.pad(a, ((0, n - a.shape[0]), (0, 0)))


def _pad_params_lane_aligned(params):
    """Zero-pad hidden dims (H, Hm) up to multiples of 128.

    Exact: padded hidden units get zero weights and zero bias (ReLU(0)=0) and
    zero outgoing rows, so they contribute nothing downstream.
    """
    (we0, be0, we1, be1, we2, be2, we3, be3, we4, be4,
     wu0x, wu0h, bu0, wu1, bu1, wu2, bu2, wuo, buo) = params
    Hp = _round_up(we0.shape[1], 128)          # 200 -> 256
    Hmp = _round_up(wu1.shape[1], 128)         # 100 -> 128
    we0, be0 = _pad_cols(we0, Hp), _pad_cols(be0, Hp)
    we1, be1 = _pad_cols(_pad_rows(we1, Hp), Hp), _pad_cols(be1, Hp)
    we2, be2 = _pad_cols(_pad_rows(we2, Hp), Hp), _pad_cols(be2, Hp)
    we3, be3 = _pad_cols(_pad_rows(we3, Hp), Hp), _pad_cols(be3, Hp)
    we4 = _pad_rows(we4, Hp)
    wu0x, wu0h, bu0 = (_pad_cols(wu0x, Hmp), _pad_cols(wu0h, Hmp),
                       _pad_cols(bu0, Hmp))
    wu1, bu1 = _pad_cols(_pad_rows(wu1, Hmp), Hmp), _pad_cols(bu1, Hmp)
    wu2, bu2 = _pad_cols(_pad_rows(wu2, Hmp), Hmp), _pad_cols(bu2, Hmp)
    wuo = _pad_rows(wuo, Hmp)
    return (we0, be0, we1, be1, we2, be2, we3, be3, we4, be4,
            wu0x, wu0h, bu0, wu1, bu1, wu2, bu2, wuo, buo)


# ------------------------------ wrapper ---------------------------------------
def partial_embedding_net_forward(params, x_mono, x_non_mono, nb_steps=10,
                                  tb=None, compute_dtype=jnp.float32):
    x_mono = jnp.asarray(x_mono, jnp.float32)
    x_non_mono = jnp.asarray(x_non_mono, jnp.float32)
    B, d_mono = x_mono.shape
    _, d_emb = x_non_mono.shape

    # Batch tile: small batches collapse to ONE grid step; otherwise 128-row
    # tiles (MXU-native M).  B is zero-padded so B % tb is handled explicitly.
    if tb is None:
        tb = min(128, _round_up(B, 16))
    B_pad = _round_up(B, tb)
    # Keep the lane-dense (1, B_pad) output legal: either a single block
    # covering the full array, or 128-multiple lane blocks.
    assert B_pad == tb or tb % 128 == 0, "tb must be a multiple of 128 when B_pad > tb"
    if B_pad != B:
        x_mono = jnp.pad(x_mono, ((0, B_pad - B), (0, 0)))
        x_non_mono = jnp.pad(x_non_mono, ((0, B_pad - B), (0, 0)))

    # Clenshaw-Curtis nodes/weights, replicated per batch row so the kernel
    # batches all K = nb_steps+1 nodes into one big-M matmul per UMNN layer.
    # The outer 0.5 quadrature factor is folded into the weight vector here.
    cc_w_np, cc_s_np = compute_cc_weights(nb_steps)
    s_row = jnp.asarray(np.repeat((cc_s_np + 1.0) * 0.5, tb)[:, None])   # (K*tb, 1)
    w_row = jnp.asarray(np.repeat(cc_w_np * 0.5, tb)[:, None])           # (K*tb, 1)

    # Lane-align hidden dims (exact) and cast MXU operands (weights + inputs);
    # biases stay f32 and accumulation is always f32.
    wp = _pad_params_lane_aligned(params)
    weight_ids = {0, 2, 4, 6, 8, 10, 11, 13, 15, 17}   # weight-matrix positions
    wp = tuple(w.astype(compute_dtype) if i in weight_ids else w.astype(jnp.float32)
               for i, w in enumerate(wp))
    xm_in = x_mono.astype(compute_dtype)
    xnm_in = x_non_mono.astype(compute_dtype)

    # Grid-invariant index_maps -> weights are DMA'd once and stay resident.
    full = lambda shape: pl.BlockSpec(shape, lambda i: (0, 0))
    in_specs = [
        full(s_row.shape), full(w_row.shape),
        pl.BlockSpec((tb, d_mono), lambda i: (i, 0)),            # x_mono tile
        pl.BlockSpec((tb, d_emb), lambda i: (i, 0)),             # x_non_mono tile
    ] + [full(w.shape) for w in wp]

    out_specs = pl.BlockSpec((1, tb), lambda i: (0, i))          # batch on lanes

    fn = pl.pallas_call(
        _partial_embedding_kernel,
        out_shape=jax.ShapeDtypeStruct((1, B_pad), jnp.float32),
        grid=(B_pad // tb,),
        in_specs=in_specs,
        out_specs=out_specs,
        compiler_params=pltpu.CompilerParams(
            dimension_semantics=("parallel",),
            vmem_limit_bytes=32 * 1024 * 1024,   # ~5 MB used; explicit & safe on v5e/v6e/v7x
        ),
    )
    out_row = fn(s_row, w_row, xm_in, xnm_in, *wp)               # (1, B_pad)
    return out_row[0, :B].reshape(B, 1)


# --------------------- deterministic parameter init ---------------------------
def init_params(key, in_embedding, in_main, out_embedding,
                num_embedding_layers=3, num_embedding_hiddens=200,
                num_main_hidden_layers=3, num_main_hidden_nodes=100):
    assert num_embedding_layers == 3 and num_main_hidden_layers == 3, \
        "kernel is specialized to the module's default layer counts"
    keys = iter(jax.random.split(key, 16))

    def lin(fan_in, fan_out):
        kw, kb = jax.random.split(next(keys))
        bound = 1.0 / math.sqrt(fan_in)
        W = jax.random.uniform(kw, (fan_in, fan_out), jnp.float32, -bound, bound)
        b = jax.random.uniform(kb, (1, fan_out), jnp.float32, -bound, bound)
        return W, b

    H, Hm = num_embedding_hiddens, num_main_hidden_nodes
    # embedding_net: in -> H -> H -> H -> H -> out_embedding (ReLU after each)
    we0, be0 = lin(in_embedding, H)
    we1, be1 = lin(H, H)
    we2, be2 = lin(H, H)
    we3, be3 = lin(H, H)
    we4, be4 = lin(H, out_embedding)
    # UMNN integrand MLP: (in_main + out_embedding) -> Hm -> Hm -> Hm -> in_main
    wu0_full, bu0 = lin(in_main + out_embedding, Hm)
    wu0x, wu0h = wu0_full[:in_main], wu0_full[in_main:]
    wu1, bu1 = lin(Hm, Hm)
    wu2, bu2 = lin(Hm, Hm)
    wuo, buo = lin(Hm, in_main)
    return (we0, be0, we1, be1, we2, be2, we3, be3, we4, be4,
            wu0x, wu0h, bu0, wu1, bu1, wu2, bu2, wuo, buo)


# --------------------------- pure-JAX reference -------------------------------
def reference_forward(params, cc_w, cc_s, x_mono, x_non_mono):
    (we0, be0, we1, be1, we2, be2, we3, be3, we4, be4,
     wu0x, wu0h, bu0, wu1, bu1, wu2, bu2, wuo, buo) = params
    relu = lambda v: jnp.maximum(v, 0.0)
    h = relu(x_non_mono @ we0 + be0)
    h = relu(h @ we1 + be1)
    h = relu(h @ we2 + be2)
    h = relu(h @ we3 + be3)
    h = relu(h @ we4 + be4)
    hc = h @ wu0h + bu0
    acc = jnp.zeros_like(x_mono)
    for k in range(cc_w.shape[0]):
        s = (cc_s[k] + 1.0) * 0.5
        a = relu((x_mono * s) @ wu0x + hc)
        a = relu(a @ wu1 + bu1)
        a = relu(a @ wu2 + bu2)
        g = a @ wuo + buo
        g = jnp.where(g > 0.0, g + 1.0, jnp.exp(g))
        acc = acc + cc_w[k] * g
    f = jnp.sum(0.5 * acc * x_mono, axis=-1, keepdims=True)
    return jnp.nan_to_num(1.0 / (1.0 + jnp.exp(-f)))


if __name__ == "__main__":
    B = 16
    in_embedding = 16      # x_non_mono feature dim
    in_main = 4            # x_mono (monotone) feature dim
    out_embedding = 8
    nb_steps = 10

    key = jax.random.PRNGKey(0)
    kp, kx1, kx2 = jax.random.split(key, 3)
    params = init_params(kp, in_embedding, in_main, out_embedding)
    x_mono = jax.random.uniform(kx1, (B, in_main), jnp.float32)
    x_non_mono = jax.random.normal(kx2, (B, in_embedding), jnp.float32)

    # f32 path (tight tolerance vs pure-JAX reference).
    out = partial_embedding_net_forward(params, x_mono, x_non_mono,
                                        nb_steps=nb_steps)
    out = jax.block_until_ready(out)
    assert out.shape == (B, 1)

    cc_w_np, cc_s_np = compute_cc_weights(nb_steps)
    ref = reference_forward(params, jnp.asarray(cc_w_np), jnp.asarray(cc_s_np),
                            x_mono, x_non_mono)
    np.testing.assert_allclose(np.asarray(out), np.asarray(ref),
                               rtol=5e-5, atol=5e-5)

    # bf16 weights/activations (v6e/v7x MXU-friendly), f32 accumulation;
    # tolerance relaxed accordingly.
    out_bf16 = partial_embedding_net_forward(params, x_mono, x_non_mono,
                                             nb_steps=nb_steps,
                                             compute_dtype=jnp.bfloat16)
    out_bf16 = jax.block_until_ready(out_bf16)
    np.testing.assert_allclose(np.asarray(out_bf16), np.asarray(ref),
                               rtol=0.0, atol=5e-2)

    print("KERNEL_OK")
</pallas_src>

<mosaic_0001>
module attributes {stable_mosaic.version = 11 : i64} {
  func.func @_partial_embedding_kernel(%arg0: i32, %arg1: memref<176x1xf32, #tpu.memory_space<vmem>>, %arg2: memref<176x1xf32, #tpu.memory_space<vmem>>, %arg3: memref<16x4xf32, #tpu.memory_space<vmem>>, %arg4: memref<16x16xf32, #tpu.memory_space<vmem>>, %arg5: memref<16x256xf32, #tpu.memory_space<vmem>>, %arg6: memref<1x256xf32, #tpu.memory_space<vmem>>, %arg7: memref<256x256xf32, #tpu.memory_space<vmem>>, %arg8: memref<1x256xf32, #tpu.memory_space<vmem>>, %arg9: memref<256x256xf32, #tpu.memory_space<vmem>>, %arg10: memref<1x256xf32, #tpu.memory_space<vmem>>, %arg11: memref<256x256xf32, #tpu.memory_space<vmem>>, %arg12: memref<1x256xf32, #tpu.memory_space<vmem>>, %arg13: memref<256x8xf32, #tpu.memory_space<vmem>>, %arg14: memref<1x8xf32, #tpu.memory_space<vmem>>, %arg15: memref<4x128xf32, #tpu.memory_space<vmem>>, %arg16: memref<8x128xf32, #tpu.memory_space<vmem>>, %arg17: memref<1x128xf32, #tpu.memory_space<vmem>>, %arg18: memref<128x128xf32, #tpu.memory_space<vmem>>, %arg19: memref<1x128xf32, #tpu.memory_space<vmem>>, %arg20: memref<128x128xf32, #tpu.memory_space<vmem>>, %arg21: memref<1x128xf32, #tpu.memory_space<vmem>>, %arg22: memref<128x4xf32, #tpu.memory_space<vmem>>, %arg23: memref<1x4xf32, #tpu.memory_space<vmem>>, %arg24: memref<1x16xf32, #tpu.memory_space<vmem>>) attributes {dimension_semantics = [#tpu.dimension_semantics<parallel>], iteration_bounds = array<i64: 1>, scalar_prefetch = 0 : i64, scratch_operands = 0 : i64, tpu.core_type = #tpu.core_type<tc>, window_params = [{pipeline_mode = #tpu.pipeline_mode<synchronous>, transform_indices = @transform_0, window_bounds = array<i64: 176, 1>}, {pipeline_mode = #tpu.pipeline_mode<synchronous>, transform_indices = @transform_1, window_bounds = array<i64: 176, 1>}, {transform_indices = @transform_2, window_bounds = array<i64: 16, 4>}, {transform_indices = @transform_3, window_bounds = array<i64: 16, 16>}, {pipeline_mode = #tpu.pipeline_mode<synchronous>, transform_indices = @transform_4, window_bounds = array<i64: 16, 256>}, {pipeline_mode = #tpu.pipeline_mode<synchronous>, transform_indices = @transform_5, window_bounds = array<i64: 1, 256>}, {pipeline_mode = #tpu.pipeline_mode<synchronous>, transform_indices = @transform_6, window_bounds = array<i64: 256, 256>}, {pipeline_mode = #tpu.pipeline_mode<synchronous>, transform_indices = @transform_7, window_bounds = array<i64: 1, 256>}, {pipeline_mode = #tpu.pipeline_mode<synchronous>, transform_indices = @transform_8, window_bounds = array<i64: 256, 256>}, {pipeline_mode = #tpu.pipeline_mode<synchronous>, transform_indices = @transform_9, window_bounds = array<i64: 1, 256>}, {pipeline_mode = #tpu.pipeline_mode<synchronous>, transform_indices = @transform_10, window_bounds = array<i64: 256, 256>}, {pipeline_mode = #tpu.pipeline_mode<synchronous>, transform_indices = @transform_11, window_bounds = array<i64: 1, 256>}, {pipeline_mode = #tpu.pipeline_mode<synchronous>, transform_indices = @transform_12, window_bounds = array<i64: 256, 8>}, {pipeline_mode = #tpu.pipeline_mode<synchronous>, transform_indices = @transform_13, window_bounds = array<i64: 1, 8>}, {pipeline_mode = #tpu.pipeline_mode<synchronous>, transform_indices = @transform_14, window_bounds = array<i64: 4, 128>}, {pipeline_mode = #tpu.pipeline_mode<synchronous>, transform_indices = @transform_15, window_bounds = array<i64: 8, 128>}, {pipeline_mode = #tpu.pipeline_mode<synchronous>, transform_indices = @transform_16, window_bounds = array<i64: 1, 128>}, {pipeline_mode = #tpu.pipeline_mode<synchronous>, transform_indices = @transform_17, window_bounds = array<i64: 128, 128>}, {pipeline_mode = #tpu.pipeline_mode<synchronous>, transform_indices = @transform_18, window_bounds = array<i64: 1, 128>}, {pipeline_mode = #tpu.pipeline_mode<synchronous>, transform_indices = @transform_19, window_bounds = array<i64: 128, 128>}, {pipeline_mode = #tpu.pipeline_mode<synchronous>, transform_indices = @transform_20, window_bounds = array<i64: 1, 128>}, {pipeline_mode = #tpu.pipeline_mode<synchronous>, transform_indices = @transform_21, window_bounds = array<i64: 128, 4>}, {pipeline_mode = #tpu.pipeline_mode<synchronous>, transform_indices = @transform_22, window_bounds = array<i64: 1, 4>}, {transform_indices = @transform_23, window_bounds = array<i64: 1, 16>}]} {
    %c0 = arith.constant 0 : index
    %c0_0 = arith.constant 0 : index
    %0 = vector.load %arg4[%c0, %c0_0] : memref<16x16xf32, #tpu.memory_space<vmem>>, vector<16x16xf32>
    %c0_1 = arith.constant 0 : index
    %c0_2 = arith.constant 0 : index
    %1 = vector.load %arg5[%c0_1, %c0_2] : memref<16x256xf32, #tpu.memory_space<vmem>>, vector<16x256xf32>
    %cst = arith.constant dense<0.000000e+00> : vector<16x256xf32>
    %2 = tpu.matmul %0, %1, %cst {dimension_numbers = #tpu.dot_dimension_numbers<[1], [0], [0], [1], [0, 0, 1, 1], [], []>} : vector<16x16xf32>, vector<16x256xf32>, vector<16x256xf32> -> vector<16x256xf32>
    %c0_3 = arith.constant 0 : index
    %c0_4 = arith.constant 0 : index
    %3 = vector.load %arg6[%c0_3, %c0_4] : memref<1x256xf32, #tpu.memory_space<vmem>>, vector<1x256xf32>
    %4 = vector.broadcast %3 : vector<1x256xf32> to vector<16x256xf32>
    %5 = arith.addf %2, %4 : vector<16x256xf32>
    %cst_5 = arith.constant 0.000000e+00 : f32
    %6 = vector.broadcast %cst_5 : f32 to vector<16x256xf32>
    %7 = arith.maximumf %5, %6 : vector<16x256xf32>
    %c0_6 = arith.constant 0 : index
    %c0_7 = arith.constant 0 : index
    %8 = vector.load %arg7[%c0_6, %c0_7] : memref<256x256xf32, #tpu.memory_space<vmem>>, vector<256x256xf32>
    %cst_8 = arith.constant dense<0.000000e+00> : vector<16x256xf32>
    %9 = tpu.matmul %7, %8, %cst_8 {dimension_numbers = #tpu.dot_dimension_numbers<[1], [0], [0], [1], [0, 0, 1, 1], [], []>} : vector<16x256xf32>, vector<256x256xf32>, vector<16x256xf32> -> vector<16x256xf32>
    %c0_9 = arith.constant 0 : index
    %c0_10 = arith.constant 0 : index
    %10 = vector.load %arg8[%c0_9, %c0_10] : memref<1x256xf32, #tpu.memory_space<vmem>>, vector<1x256xf32>
    %11 = vector.broadcast %10 : vector<1x256xf32> to vector<16x256xf32>
    %12 = arith.addf %9, %11 : vector<16x256xf32>
    %cst_11 = arith.constant 0.000000e+00 : f32
    %13 = vector.broadcast %cst_11 : f32 to vector<16x256xf32>
    %14 = arith.maximumf %12, %13 : vector<16x256xf32>
    %c0_12 = arith.constant 0 : index
    %c0_13 = arith.constant 0 : index
    %15 = vector.load %arg9[%c0_12, %c0_13] : memref<256x256xf32, #tpu.memory_space<vmem>>, vector<256x256xf32>
    %cst_14 = arith.constant dense<0.000000e+00> : vector<16x256xf32>
    %16 = tpu.matmul %14, %15, %cst_14 {dimension_numbers = #tpu.dot_dimension_numbers<[1], [0], [0], [1], [0, 0, 1, 1], [], []>} : vector<16x256xf32>, vector<256x256xf32>, vector<16x256xf32> -> vector<16x256xf32>
    %c0_15 = arith.constant 0 : index
    %c0_16 = arith.constant 0 : index
    %17 = vector.load %arg10[%c0_15, %c0_16] : memref<1x256xf32, #tpu.memory_space<vmem>>, vector<1x256xf32>
    %18 = vector.broadcast %17 : vector<1x256xf32> to vector<16x256xf32>
    %19 = arith.addf %16, %18 : vector<16x256xf32>
    %cst_17 = arith.constant 0.000000e+00 : f32
    %20 = vector.broadcast %cst_17 : f32 to vector<16x256xf32>
    %21 = arith.maximumf %19, %20 : vector<16x256xf32>
    %c0_18 = arith.constant 0 : index
    %c0_19 = arith.constant 0 : index
    %22 = vector.load %arg11[%c0_18, %c0_19] : memref<256x256xf32, #tpu.memory_space<vmem>>, vector<256x256xf32>
    %cst_20 = arith.constant dense<0.000000e+00> : vector<16x256xf32>
    %23 = tpu.matmul %21, %22, %cst_20 {dimension_numbers = #tpu.dot_dimension_numbers<[1], [0], [0], [1], [0, 0, 1, 1], [], []>} : vector<16x256xf32>, vector<256x256xf32>, vector<16x256xf32> -> vector<16x256xf32>
    %c0_21 = arith.constant 0 : index
    %c0_22 = arith.constant 0 : index
    %24 = vector.load %arg12[%c0_21, %c0_22] : memref<1x256xf32, #tpu.memory_space<vmem>>, vector<1x256xf32>
    %25 = vector.broadcast %24 : vector<1x256xf32> to vector<16x256xf32>
    %26 = arith.addf %23, %25 : vector<16x256xf32>
    %cst_23 = arith.constant 0.000000e+00 : f32
    %27 = vector.broadcast %cst_23 : f32 to vector<16x256xf32>
    %28 = arith.maximumf %26, %27 : vector<16x256xf32>
    %c0_24 = arith.constant 0 : index
    %c0_25 = arith.constant 0 : index
    %29 = vector.load %arg13[%c0_24, %c0_25] : memref<256x8xf32, #tpu.memory_space<vmem>>, vector<256x8xf32>
    %cst_26 = arith.constant dense<0.000000e+00> : vector<16x8xf32>
    %30 = tpu.matmul %28, %29, %cst_26 {dimension_numbers = #tpu.dot_dimension_numbers<[1], [0], [0], [1], [0, 0, 1, 1], [], []>} : vector<16x256xf32>, vector<256x8xf32>, vector<16x8xf32> -> vector<16x8xf32>
    %c0_27 = arith.constant 0 : index
    %c0_28 = arith.constant 0 : index
    %31 = vector.load %arg14[%c0_27, %c0_28] : memref<1x8xf32, #tpu.memory_space<vmem>>, vector<1x8xf32>
    %32 = vector.broadcast %31 : vector<1x8xf32> to vector<16x8xf32>
    %33 = arith.addf %30, %32 : vector<16x8xf32>
    %cst_29 = arith.constant 0.000000e+00 : f32
    %34 = vector.broadcast %cst_29 : f32 to vector<16x8xf32>
    %35 = arith.maximumf %33, %34 : vector<16x8xf32>
    %c0_30 = arith.constant 0 : index
    %c0_31 = arith.constant 0 : index
    %36 = vector.load %arg3[%c0_30, %c0_31] : memref<16x4xf32, #tpu.memory_space<vmem>>, vector<16x4xf32>
    %c0_32 = arith.constant 0 : index
    %c0_33 = arith.constant 0 : index
    %37 = vector.load %arg16[%c0_32, %c0_33] : memref<8x128xf32, #tpu.memory_space<vmem>>, vector<8x128xf32>
    %cst_34 = arith.constant dense<0.000000e+00> : vector<16x128xf32>
    %38 = tpu.matmul %35, %37, %cst_34 {dimension_numbers = #tpu.dot_dimension_numbers<[1], [0], [0], [1], [0, 0, 1, 1], [], []>} : vector<16x8xf32>, vector<8x128xf32>, vector<16x128xf32> -> vector<16x128xf32>
    %c0_35 = arith.constant 0 : index
    %c0_36 = arith.constant 0 : index
    %39 = vector.load %arg17[%c0_35, %c0_36] : memref<1x128xf32, #tpu.memory_space<vmem>>, vector<1x128xf32>
    %40 = vector.broadcast %39 : vector<1x128xf32> to vector<16x128xf32>
    %41 = arith.addf %38, %40 : vector<16x128xf32>
    %c0_37 = arith.constant 0 : index
    %c0_38 = arith.constant 0 : index
    %42 = vector.load %arg3[%c0_37, %c0_38] : memref<16x4xf32, #tpu.memory_space<vmem>>, vector<16x4xf32>
    %c0_39 = arith.constant 0 : index
    %c0_40 = arith.constant 0 : index
    %43 = vector.load %arg15[%c0_39, %c0_40] : memref<4x128xf32, #tpu.memory_space<vmem>>, vector<4x128xf32>
    %cst_41 = arith.constant dense<0.000000e+00> : vector<16x128xf32>
    %44 = tpu.matmul %42, %43, %cst_41 {dimension_numbers = #tpu.dot_dimension_numbers<[1], [0], [0], [1], [0, 0, 1, 1], [], []>} : vector<16x4xf32>, vector<4x128xf32>, vector<16x128xf32> -> vector<16x128xf32>
    %45 = tpu.concatenate %44, %44, %44, %44, %44, %44, %44, %44, %44, %44, %44 in 0 : vector<16x128xf32>, vector<16x128xf32>, vector<16x128xf32>, vector<16x128xf32>, vector<16x128xf32>, vector<16x128xf32>, vector<16x128xf32>, vector<16x128xf32>, vector<16x128xf32>, vector<16x128xf32>, vector<16x128xf32> -> vector<176x128xf32>
    %46 = tpu.concatenate %41, %41, %41, %41, %41, %41, %41, %41, %41, %41, %41 in 0 : vector<16x128xf32>, vector<16x128xf32>, vector<16x128xf32>, vector<16x128xf32>, vector<16x128xf32>, vector<16x128xf32>, vector<16x128xf32>, vector<16x128xf32>, vector<16x128xf32>, vector<16x128xf32>, vector<16x128xf32> -> vector<176x128xf32>
    %c0_42 = arith.constant 0 : index
    %c0_43 = arith.constant 0 : index
    %47 = vector.load %arg1[%c0_42, %c0_43] : memref<176x1xf32, #tpu.memory_space<vmem>>, vector<176x1xf32>
    %48 = vector.broadcast %47 : vector<176x1xf32> to vector<176x128xf32>
    %49 = arith.mulf %48, %45 : vector<176x128xf32>
    %50 = arith.addf %49, %46 : vector<176x128xf32>
    %cst_44 = arith.constant 0.000000e+00 : f32
    %51 = vector.broadcast %cst_44 : f32 to vector<176x128xf32>
    %52 = arith.maximumf %50, %51 : vector<176x128xf32>
    %c0_45 = arith.constant 0 : index
    %c0_46 = arith.constant 0 : index
    %53 = vector.load %arg18[%c0_45, %c0_46] : memref<128x128xf32, #tpu.memory_space<vmem>>, vector<128x128xf32>
    %cst_47 = arith.constant dense<0.000000e+00> : vector<176x128xf32>
    %54 = tpu.matmul %52, %53, %cst_47 {dimension_numbers = #tpu.dot_dimension_numbers<[1], [0], [0], [1], [0, 0, 1, 1], [], []>} : vector<176x128xf32>, vector<128x128xf32>, vector<176x128xf32> -> vector<176x128xf32>
    %c0_48 = arith.constant 0 : index
    %c0_49 = arith.constant 0 : index
    %55 = vector.load %arg19[%c0_48, %c0_49] : memref<1x128xf32, #tpu.memory_space<vmem>>, vector<1x128xf32>
    %56 = vector.broadcast %55 : vector<1x128xf32> to vector<176x128xf32>
    %57 = arith.addf %54, %56 : vector<176x128xf32>
    %cst_50 = arith.constant 0.000000e+00 : f32
    %58 = vector.broadcast %cst_50 : f32 to vector<176x128xf32>
    %59 = arith.maximumf %57, %58 : vector<176x128xf32>
    %c0_51 = arith.constant 0 : index
    %c0_52 = arith.constant 0 : index
    %60 = vector.load %arg20[%c0_51, %c0_52] : memref<128x128xf32, #tpu.memory_space<vmem>>, vector<128x128xf32>
    %cst_53 = arith.constant dense<0.000000e+00> : vector<176x128xf32>
    %61 = tpu.matmul %59, %60, %cst_53 {dimension_numbers = #tpu.dot_dimension_numbers<[1], [0], [0], [1], [0, 0, 1, 1], [], []>} : vector<176x128xf32>, vector<128x128xf32>, vector<176x128xf32> -> vector<176x128xf32>
    %c0_54 = arith.constant 0 : index
    %c0_55 = arith.constant 0 : index
    %62 = vector.load %arg21[%c0_54, %c0_55] : memref<1x128xf32, #tpu.memory_space<vmem>>, vector<1x128xf32>
    %63 = vector.broadcast %62 : vector<1x128xf32> to vector<176x128xf32>
    %64 = arith.addf %61, %63 : vector<176x128xf32>
    %cst_56 = arith.constant 0.000000e+00 : f32
    %65 = vector.broadcast %cst_56 : f32 to vector<176x128xf32>
    %66 = arith.maximumf %64, %65 : vector<176x128xf32>
    %c0_57 = arith.constant 0 : index
    %c0_58 = arith.constant 0 : index
    %67 = vector.load %arg22[%c0_57, %c0_58] : memref<128x4xf32, #tpu.memory_space<vmem>>, vector<128x4xf32>
    %cst_59 = arith.constant dense<0.000000e+00> : vector<176x4xf32>
    %68 = tpu.matmul %66, %67, %cst_59 {dimension_numbers = #tpu.dot_dimension_numbers<[1], [0], [0], [1], [0, 0, 1, 1], [], []>} : vector<176x128xf32>, vector<128x4xf32>, vector<176x4xf32> -> vector<176x4xf32>
    %c0_60 = arith.constant 0 : index
    %c0_61 = arith.constant 0 : index
    %69 = vector.load %arg23[%c0_60, %c0_61] : memref<1x4xf32, #tpu.memory_space<vmem>>, vector<1x4xf32>
    %70 = vector.broadcast %69 : vector<1x4xf32> to vector<176x4xf32>
    %71 = arith.addf %68, %70 : vector<176x4xf32>
    %cst_62 = arith.constant 0.000000e+00 : f32
    %72 = vector.broadcast %cst_62 : f32 to vector<176x4xf32>
    %73 = arith.cmpf ogt, %71, %72 : vector<176x4xf32>
    %cst_63 = arith.constant 1.000000e+00 : f32
    %74 = vector.broadcast %cst_63 : f32 to vector<176x4xf32>
    %75 = arith.addf %71, %74 : vector<176x4xf32>
    %76 = math.exp %71 : vector<176x4xf32>
    %77 = arith.select %73, %75, %76 : vector<176x4xi1>, vector<176x4xf32>
    %c0_64 = arith.constant 0 : index
    %c0_65 = arith.constant 0 : index
    %78 = vector.load %arg2[%c0_64, %c0_65] : memref<176x1xf32, #tpu.memory_space<vmem>>, vector<176x1xf32>
    %79 = vector.broadcast %78 : vector<176x1xf32> to vector<176x4xf32>
    %80 = arith.mulf %77, %79 : vector<176x4xf32>
    %81 = vector.shape_cast %80 : vector<176x4xf32> to vector<11x16x4xf32>
    %cst_66 = arith.constant dense<0.000000e+00> : vector<16x4xf32>
    %82 = vector.multi_reduction <add>, %81, %cst_66 [0] : vector<11x16x4xf32> to vector<16x4xf32>
    %83 = arith.mulf %82, %36 : vector<16x4xf32>
    %cst_67 = arith.constant dense<0.000000e+00> : vector<16xf32>
    %84 = vector.multi_reduction <add>, %83, %cst_67 [1] : vector<16x4xf32> to vector<16xf32>
    %85 = vector.shape_cast %84 : vector<16xf32> to vector<16x1xf32>
    %86 = tpu.iota {dimensions = array<i32: 0>} : vector<16x16xi32>
    %87 = tpu.iota {dimensions = array<i32: 1>} : vector<16x16xi32>
    %88 = arith.cmpi eq, %86, %87 : vector<16x16xi32>
    %cst_68 = arith.constant 0.000000e+00 : f32
    %89 = vector.shape_cast %85 : vector<16x1xf32> to vector<16x1xf32>
    %90 = vector.broadcast %89 : vector<16x1xf32> to vector<16x16xf32>
    %91 = vector.broadcast %cst_68 : f32 to vector<16x16xf32>
    %92 = arith.select %88, %90, %91 : vector<16x16xi1>, vector<16x16xf32>
    %cst_69 = arith.constant dense<0.000000e+00> : vector<16xf32>
    %93 = vector.multi_reduction <add>, %92, %cst_69 [0] : vector<16x16xf32> to vector<16xf32>
    %94 = vector.shape_cast %93 : vector<16xf32> to vector<1x16xf32>
    %cst_70 = arith.constant 0.000000e+00 : f32
    %95 = vector.broadcast %cst_70 : f32 to vector<1x16xf32>
    %96 = arith.subf %95, %94 : vector<1x16xf32>
    %97 = math.exp %96 : vector<1x16xf32>
    %cst_71 = arith.constant 1.000000e+00 : f32
    %98 = vector.broadcast %cst_71 : f32 to vector<1x16xf32>
    %99 = arith.addf %98, %97 : vector<1x16xf32>
    %100 = tpu.reciprocal %99 : vector<1x16xf32> -> vector<1x16xf32>
    %101 = arith.cmpf one, %100, %100 : vector<1x16xf32>
    %cst_72 = arith.constant 0.000000e+00 : f32
    %102 = vector.broadcast %cst_72 : f32 to vector<1x16xf32>
    %103 = arith.select %101, %102, %100 : vector<1x16xi1>, vector<1x16xf32>
    %c0_73 = arith.constant 0 : index
    %c0_74 = arith.constant 0 : index
    %104 = vector.load %arg24[%c0_73, %c0_74] : memref<1x16xf32, #tpu.memory_space<vmem>>, vector<1x16xf32>
    tpu.vector_store %arg24[%c0_73, %c0_74], %103 {strides = array<i32>} : memref<1x16xf32, #tpu.memory_space<vmem>>, vector<1x16xf32>,
    return
  }
  func.func @transform_0(%arg0: i32) -> (i32, i32) {
    %c0_i32 = arith.constant 0 : i32
    %c0_i32_0 = arith.constant 0 : i32
    %c0_i32_1 = arith.constant 0 : i32
    return %c0_i32, %c0_i32_0 : i32, i32
  }
  func.func @transform_1(%arg0: i32) -> (i32, i32) {
    %c0_i32 = arith.constant 0 : i32
    %c0_i32_0 = arith.constant 0 : i32
    %c0_i32_1 = arith.constant 0 : i32
    return %c0_i32, %c0_i32_0 : i32, i32
  }
  func.func @transform_2(%arg0: i32) -> (i32, i32) {
    %c0_i32 = arith.constant 0 : i32
    %c0_i32_0 = arith.constant 0 : i32
    return %arg0, %c0_i32 : i32, i32
  }
  func.func @transform_3(%arg0: i32) -> (i32, i32) {
    %c0_i32 = arith.constant 0 : i32
    %c0_i32_0 = arith.constant 0 : i32
    return %arg0, %c0_i32 : i32, i32
  }
  func.func @transform_4(%arg0: i32) -> (i32, i32) {
    %c0_i32 = arith.constant 0 : i32
    %c0_i32_0 = arith.constant 0 : i32
    %c0_i32_1 = arith.constant 0 : i32
    return %c0_i32, %c0_i32_0 : i32, i32
  }
  func.func @transform_5(%arg0: i32) -> (i32, i32) {
    %c0_i32 = arith.constant 0 : i32
    %c0_i32_0 = arith.constant 0 : i32
    %c0_i32_1 = arith.constant 0 : i32
    return %c0_i32, %c0_i32_0 : i32, i32
  }
  func.func @transform_6(%arg0: i32) -> (i32, i32) {
    %c0_i32 = arith.constant 0 : i32
    %c0_i32_0 = arith.constant 0 : i32
    %c0_i32_1 = arith.constant 0 : i32
    return %c0_i32, %c0_i32_0 : i32, i32
  }
  func.func @transform_7(%arg0: i32) -> (i32, i32) {
    %c0_i32 = arith.constant 0 : i32
    %c0_i32_0 = arith.constant 0 : i32
    %c0_i32_1 = arith.constant 0 : i32
    return %c0_i32, %c0_i32_0 : i32, i32
  }
  func.func @transform_8(%arg0: i32) -> (i32, i32) {
    %c0_i32 = arith.constant 0 : i32
    %c0_i32_0 = arith.constant 0 : i32
    %c0_i32_1 = arith.constant 0 : i32
    return %c0_i32, %c0_i32_0 : i32, i32
  }
  func.func @transform_9(%arg0: i32) -> (i32, i32) {
    %c0_i32 = arith.constant 0 : i32
    %c0_i32_0 = arith.constant 0 : i32
    %c0_i32_1 = arith.constant 0 : i32
    return %c0_i32, %c0_i32_0 : i32, i32
  }
  func.func @transform_10(%arg0: i32) -> (i32, i32) {
    %c0_i32 = arith.constant 0 : i32
    %c0_i32_0 = arith.constant 0 : i32
    %c0_i32_1 = arith.constant 0 : i32
    return %c0_i32, %c0_i32_0 : i32, i32
  }
  func.func @transform_11(%arg0: i32) -> (i32, i32) {
    %c0_i32 = arith.constant 0 : i32
    %c0_i32_0 = arith.constant 0 : i32
    %c0_i32_1 = arith.constant 0 : i32
    return %c0_i32, %c0_i32_0 : i32, i32
  }
  func.func @transform_12(%arg0: i32) -> (i32, i32) {
    %c0_i32 = arith.constant 0 : i32
    %c0_i32_0 = arith.constant 0 : i32
    %c0_i32_1 = arith.constant 0 : i32
    return %c0_i32, %c0_i32_0 : i32, i32
  }
  func.func @transform_13(%arg0: i32) -> (i32, i32) {
    %c0_i32 = arith.constant 0 : i32
    %c0_i32_0 = arith.constant 0 : i32
    %c0_i32_1 = arith.constant 0 : i32
    return %c0_i32, %c0_i32_0 : i32, i32
  }
  func.func @transform_14(%arg0: i32) -> (i32, i32) {
    %c0_i32 = arith.constant 0 : i32
    %c0_i32_0 = arith.constant 0 : i32
    %c0_i32_1 = arith.constant 0 : i32
    return %c0_i32, %c0_i32_0 : i32, i32
  }
  func.func @transform_15(%arg0: i32) -> (i32, i32) {
    %c0_i32 = arith.constant 0 : i32
    %c0_i32_0 = arith.constant 0 : i32
    %c0_i32_1 = arith.constant 0 : i32
    return %c0_i32, %c0_i32_0 : i32, i32
  }
  func.func @transform_16(%arg0: i32) -> (i32, i32) {
    %c0_i32 = arith.constant 0 : i32
    %c0_i32_0 = arith.constant 0 : i32
    %c0_i32_1 = arith.constant 0 : i32
    return %c0_i32, %c0_i32_0 : i32, i32
  }
  func.func @transform_17(%arg0: i32) -> (i32, i32) {
    %c0_i32 = arith.constant 0 : i32
    %c0_i32_0 = arith.constant 0 : i32
    %c0_i32_1 = arith.constant 0 : i32
    return %c0_i32, %c0_i32_0 : i32, i32
  }
  func.func @transform_18(%arg0: i32) -> (i32, i32) {
    %c0_i32 = arith.constant 0 : i32
    %c0_i32_0 = arith.constant 0 : i32
    %c0_i32_1 = arith.constant 0 : i32
    return %c0_i32, %c0_i32_0 : i32, i32
  }
  func.func @transform_19(%arg0: i32) -> (i32, i32) {
    %c0_i32 = arith.constant 0 : i32
    %c0_i32_0 = arith.constant 0 : i32
    %c0_i32_1 = arith.constant 0 : i32
    return %c0_i32, %c0_i32_0 : i32, i32
  }
  func.func @transform_20(%arg0: i32) -> (i32, i32) {
    %c0_i32 = arith.constant 0 : i32
    %c0_i32_0 = arith.constant 0 : i32
    %c0_i32_1 = arith.constant 0 : i32
    return %c0_i32, %c0_i32_0 : i32, i32
  }
  func.func @transform_21(%arg0: i32) -> (i32, i32) {
    %c0_i32 = arith.constant 0 : i32
    %c0_i32_0 = arith.constant 0 : i32
    %c0_i32_1 = arith.constant 0 : i32
    return %c0_i32, %c0_i32_0 : i32, i32
  }
  func.func @transform_22(%arg0: i32) -> (i32, i32) {
    %c0_i32 = arith.constant 0 : i32
    %c0_i32_0 = arith.constant 0 : i32
    %c0_i32_1 = arith.constant 0 : i32
    return %c0_i32, %c0_i32_0 : i32, i32
  }
  func.func @transform_23(%arg0: i32) -> (i32, i32) {
    %c0_i32 = arith.constant 0 : i32
    %c0_i32_0 = arith.constant 0 : i32
    return %c0_i32, %arg0 : i32, i32
  }
}

</mosaic_0001>

<bundles_post_ra>
// kernel: tpu_custom_call.1
= control target key start
LH: loop header
LB: loop body
LE: loop exit
PB: predicated region body
PF: predicated region fallthrough
CT: control target
= control target key end

     0   :  { %s4370_s0 = inlined_call_operand.vmem [shape: f32[176,1], index: 0, kind: input, shape index: {}]   ;;  %s4371_s1 = inlined_call_operand.vmem [shape: f32[176,1], index: 1, kind: input, shape index: {}]   ;;  %s4372_s2 = inlined_call_operand.vmem [shape: f32[16,4], index: 2, kind: input, shape index: {}]   ;;  %s4373_s3 = inlined_call_operand.hbm [shape: f32[16,16], index: 3, kind: input, shape index: {}]   ;;  %s4374_s4 = inlined_call_operand.vmem [shape: f32[16,256], index: 4, kind: input, shape index: {}]   ;;  %s4375_s5 = inlined_call_operand.hbm [shape: f32[1,256], index: 5, kind: input, shape index: {}]   ;;  %s4376_s6 = inlined_call_operand.vmem [shape: f32[256,256], index: 6, kind: input, shape index: {}]   ;;  %s4377_s7 = inlined_call_operand.hbm [shape: f32[1,256], index: 7, kind: input, shape index: {}]   ;;  %s4378_s8 = inlined_call_operand.hbm [shape: f32[256,256], index: 8, kind: input, shape index: {}]   ;;  %s4379_s9 = inlined_call_operand.hbm [shape: f32[1,256], index: 9, kind: input, shape index: {}]   ;;  %s4380_s10 = inlined_call_operand.hbm [shape: f32[256,256], index: 10, kind: input, shape index: {}]   ;;  %s4381_s11 = inlined_call_operand.hbm [shape: f32[1,256], index: 11, kind: input, shape index: {}]   ;;  %s4382_s12 = inlined_call_operand.vmem [shape: f32[256,8], index: 12, kind: input, shape index: {}]   ;;  %s4383_s13 = inlined_call_operand.vmem [shape: f32[1,8], index: 13, kind: input, shape index: {}]   ;;  %s4384_s14 = inlined_call_operand.hbm [shape: f32[4,128], index: 14, kind: input, shape index: {}]   ;;  %s4385_s15 = inlined_call_operand.vmem [shape: f32[8,128], index: 15, kind: input, shape index: {}]   ;;  %s4386_s16 = inlined_call_operand.vmem [shape: f32[1,128], index: 16, kind: input, shape index: {}]   ;;  %s4387_s17 = inlined_call_operand.vmem [shape: f32[128,128], index: 17, kind: input, shape index: {}]   ;;  %s4388_s18 = inlined_call_operand.vmem [shape: f32[1,128], index: 18, kind: input, shape index: {}]   ;;  %s4389_s19 = inlined_call_operand.vmem [shape: f32[128,128], index: 19, kind: input, shape index: {}]   ;;  %s4390_s20 = inlined_call_operand.vmem [shape: f32[1,128], index: 20, kind: input, shape index: {}]   ;;  %s4391_s21 = inlined_call_operand.vmem [shape: f32[128,4], index: 21, kind: input, shape index: {}]   ;;  %s4392_s22 = inlined_call_operand.vmem [shape: f32[1,4], index: 22, kind: input, shape index: {}]   ;;  %s4393_s23 = inlined_call_operand.hbm [shape: f32[1,16], index: 23, kind: output, shape index: {}]  }
   0x1   :  { %4403 = sst [smem:[#allocation23_spill]] %s4370_s0 }
   0x2   :  { %4404 = sst [smem:[#allocation24_spill]] %s4371_s1 }
   0x3   :  { %4405 = sst [smem:[#allocation25_spill]] %s4372_s2 }
   0x4   :  { %4406 = sst [smem:[#allocation26_spill]] %s4373_s3 }
   0x5   :  { %4407 = sst [smem:[#allocation27_spill]] %s4374_s4 }
   0x6   :  { %4408 = sst [smem:[#allocation28_spill]] %s4375_s5 }
   0x7   :  { %4409 = sst [smem:[#allocation29_spill]] %s4376_s6 }
   0x8   :  { %4410 = sst [smem:[#allocation30_spill]] %s4377_s7 }
   0x9   :  { %4411 = sst [smem:[#allocation31_spill]] %s4393_s23 }
   0xa   :  { %28 = vsyncpa [#allocation3], 0 }
   0xb   :  { %29 = vsyncpa [#allocation6], 0 }
   0xc   :  { %30 = vsyncpa [#allocation9], 0 }
   0xd   :  { %31 = vsyncpa [#allocation12], 0 }
   0xe   :  { %32 = vsyncpa [#allocation15], 0 }
   0xf   :  { %33 = vsyncpa [#allocation4], 0  ;;  %s3234_s4 = smov [#allocation5]   ;;  %s3235_s24 = smov [#allocation8]  }
  0x10   :  { %s60_s30 = sshll.u32 %s3234_s4, 4  ;;  %s81_s25 = sshll.u32 %s3235_s24, 4  ;;  %s61_s30 = int_to_ptr.vmem [resolvable:$true] %s60_s30  ;;  %s3369_s25 = int_to_ptr.vmem [resolvable:$true] %s81_s25 }
  0x11   :  { %s4412_s26 = sld [smem:[#allocation28_spill]] }
  0x17   :  { %s3024_s2 = scalar_lea.hbm %s4412_s26, 32 }
  0x18   :  { %p3025_p0 = scmp.ne.s32.totalorder %s4412_s26, %s3024_s2  ;;  %p3028_p1 = scmp.lt.u32.totalorder %s3024_s2, %s4412_s26 }
  0x1a   :  { %p3030_p2 = pnand %p3028_p1, %p3025_p0 }
  0x1c   :  { %3033 = shalt.err (!%p3030_p2)
}
  0x1d   :  { %s3034_s29 = scalar_lea.vmem %s61_s30, 32  ;;  %p3039_p4 = scmp.lt.s32.totalorder %s61_s30, %s61_s30 }
  0x1e   :  { %p3035_p3 = scmp.ne.s32.totalorder %s61_s30, %s3034_s29  ;;  %p3040_p5 = scmp.lt.s32.totalorder %s3034_s29, %s3034_s29 }
  0x20   :  { %p3041_p6 = por %p3040_p5, %p3039_p4 }
  0x22   :  { %p3042_p7 = pnand %p3041_p6, %p3035_p3 }
  0x24   :  { %3045 = shalt.err (!%p3042_p7)
}
  0x25   :  { %63 = dma.hbm_to_vmem [thread:$0]  %s4412_s26, 32, %s61_s30, [#allocation6]  }
  0x26   :  { %s3046_s5 = scalar_lea.hbm %s4378_s8, 8192 }
  0x27   :  { %p3047_p8 = scmp.ne.s32.totalorder %s4378_s8, %s3046_s5  ;;  %p3050_p9 = scmp.lt.u32.totalorder %s3046_s5, %s4378_s8 }
  0x29   :  { %p3052_p10 = pnand %p3050_p9, %p3047_p8 }
  0x2b   :  { %3055 = shalt.err (!%p3052_p10)
}
  0x2c   :  { %s3056_s7 = scalar_lea.vmem %s3369_s25, 8192  ;;  %p3061_p12 = scmp.lt.s32.totalorder %s3369_s25, %s3369_s25 }
  0x2d   :  { %p3057_p11 = scmp.ne.s32.totalorder %s3369_s25, %s3056_s7  ;;  %p3062_p13 = scmp.lt.s32.totalorder %s3056_s7, %s3056_s7 }
  0x2f   :  { %p3063_p0 = por %p3062_p13, %p3061_p12 }
  0x31   :  { %p3064_p1 = pnand %p3063_p0, %p3057_p11 }
  0x33   :  { %3067 = shalt.err (!%p3064_p1)
}
  0x34   :  { %s3236_s30 = smov 256   ;;  %s3237_s26 = smov 16  }
  0x35   :  { %87 = dma.hbm_to_vmem [thread:$0]  %s4378_s8, 8192, %s3369_s25, [#allocation9], %s3236_s30, %s3236_s30, %s3237_s26  }
  0x36   :  { %s3238_s3 = smov [#allocation11]   ;;  %s3239_s4 = smov [#allocation2]  }
  0x37   :  { %s103_s0 = sshll.u32 %s3238_s3, 4  ;;  %s45_s24 = sshll.u32 %s3239_s4, 4  ;;  %s104_s0 = int_to_ptr.vmem [resolvable:$true] %s103_s0  ;;  %s3400_s24 = int_to_ptr.vmem [resolvable:$true] %s45_s24 }
  0x38   :  { %s3068_s6 = scalar_lea.hbm %s4380_s10, 8192 }
  0x39   :  { %p3069_p2 = scmp.ne.s32.totalorder %s4380_s10, %s3068_s6  ;;  %p3072_p3 = scmp.lt.u32.totalorder %s3068_s6, %s4380_s10 }
  0x3b   :  { %p3074_p4 = pnand %p3072_p3, %p3069_p2 }
  0x3d   :  { %3077 = shalt.err (!%p3074_p4)
}
  0x3e   :  { %s3078_s8 = scalar_lea.vmem %s104_s0, 8192  ;;  %p3083_p6 = scmp.lt.s32.totalorder %s104_s0, %s104_s0 }
  0x3f   :  { %p3079_p5 = scmp.ne.s32.totalorder %s104_s0, %s3078_s8  ;;  %p3084_p7 = scmp.lt.s32.totalorder %s3078_s8, %s3078_s8 }
  0x41   :  { %p3085_p8 = por %p3084_p7, %p3083_p6 }
  0x43   :  { %p3086_p9 = pnand %p3085_p8, %p3079_p5 }
  0x45   :  { %3089 = shalt.err (!%p3086_p9)
}
  0x46   :  { %109 = dma.hbm_to_vmem [thread:$0]  %s4380_s10, 8192, %s104_s0, [#allocation12], %s3236_s30, %s3236_s30, %s3237_s26  }
  0x47   :  { %s4413_s4 = sld [smem:[#allocation26_spill]] }
  0x4d   :  { %s3090_s5 = scalar_lea.hbm %s4413_s4, 256 }
  0x4e   :  { %p3091_p10 = scmp.ne.s32.totalorder %s4413_s4, %s3090_s5  ;;  %p3094_p11 = scmp.lt.u32.totalorder %s3090_s5, %s4413_s4 }
  0x50   :  { %p3096_p12 = pnand %p3094_p11, %p3091_p10 }
  0x52   :  { %3099 = shalt.err (!%p3096_p12)
}
  0x53   :  { %s3100_s27 = scalar_lea.vmem %s3400_s24, 256  ;;  %p3105_p0 = scmp.lt.s32.totalorder %s3400_s24, %s3400_s24 }
  0x54   :  { %p3101_p13 = scmp.ne.s32.totalorder %s3400_s24, %s3100_s27  ;;  %p3106_p1 = scmp.lt.s32.totalorder %s3100_s27, %s3100_s27 }
  0x56   :  { %p3107_p2 = por %p3106_p1, %p3105_p0 }
  0x58   :  { %p3108_p3 = pnand %p3107_p2, %p3101_p13 }
  0x5a   :  { %3111 = shalt.err (!%p3108_p3)
}
  0x5b   :  { %s3240_s10 = smov 128   ;;  %s3241_s30 = smov 8  }
  0x5c   :  { %51 = dma.hbm_to_vmem [thread:$0]  %s4413_s4, 256, %s3400_s24, [#allocation3], %s3240_s10, %s3240_s10, %s3241_s30  }
  0x5d   :  { %s3242_s7 = smov [#allocation7]   ;;  %s3243_s25 = smov [#allocation10]  }
  0x5e   :  { %s72_s8 = sshll.u32 %s3242_s7, 4  ;;  %s94_s28 = sshll.u32 %s3243_s25, 4  ;;  %s73_s8 = int_to_ptr.vmem [resolvable:$true] %s72_s8  ;;  %s95_s28 = int_to_ptr.vmem [resolvable:$true] %s94_s28 }
  0x5f   :  { %s4414_s5 = sld [smem:[#allocation30_spill]] }
  0x65   :  { %s3112_s1 = scalar_lea.hbm %s4414_s5, 32 }
  0x66   :  { %p3113_p4 = scmp.ne.s32.totalorder %s4414_s5, %s3112_s1  ;;  %p3116_p5 = scmp.lt.u32.totalorder %s3112_s1, %s4414_s5 }
  0x68   :  { %p3118_p6 = pnand %p3116_p5, %p3113_p4 }
  0x6a   :  { %3121 = shalt.err (!%p3118_p6)
}
  0x6b   :  { %s3122_s24 = scalar_lea.vmem %s73_s8, 32  ;;  %p3127_p8 = scmp.lt.s32.totalorder %s73_s8, %s73_s8 }
  0x6c   :  { %p3123_p7 = scmp.ne.s32.totalorder %s73_s8, %s3122_s24  ;;  %p3128_p9 = scmp.lt.s32.totalorder %s3122_s24, %s3122_s24 }
  0x6e   :  { %p3129_p10 = por %p3128_p9, %p3127_p8 }
  0x70   :  { %p3130_p11 = pnand %p3129_p10, %p3123_p7 }
  0x72   :  { %3133 = shalt.err (!%p3130_p11)
}
  0x73   :  { %75 = dma.hbm_to_vmem [thread:$0]  %s4414_s5, 32, %s73_s8, [#allocation6]  }
  0x74   :  { %s3134_s0 = scalar_lea.hbm %s4379_s9, 32 }
  0x75   :  { %p3135_p12 = scmp.ne.s32.totalorder %s4379_s9, %s3134_s0  ;;  %p3138_p13 = scmp.lt.u32.totalorder %s3134_s0, %s4379_s9 }
  0x77   :  { %p3140_p0 = pnand %p3138_p13, %p3135_p12 }
  0x79   :  { %3143 = shalt.err (!%p3140_p0)
}
  0x7a   :  { %s3144_s1 = scalar_lea.vmem %s95_s28, 32  ;;  %p3149_p2 = scmp.lt.s32.totalorder %s95_s28, %s95_s28 }
  0x7b   :  { %p3145_p1 = scmp.ne.s32.totalorder %s95_s28, %s3144_s1  ;;  %p3150_p3 = scmp.lt.s32.totalorder %s3144_s1, %s3144_s1 }
  0x7d   :  { %p3151_p4 = por %p3150_p3, %p3149_p2 }
  0x7f   :  { %p3152_p5 = pnand %p3151_p4, %p3145_p1 }
  0x81   :  { %3155 = shalt.err (!%p3152_p5)
}
  0x82   :  { %97 = dma.hbm_to_vmem [thread:$0]  %s4379_s9, 32, %s95_s28, [#allocation9]  }
  0x83   :  { %s3244_s23 = smov [#allocation13]   ;;  %s3245_s2 = smov [#allocation14]  }
  0x84   :  { %s116_s6 = sshll.u32 %s3244_s23, 4  ;;  %s130_s27 = sshll.u32 %s3245_s2, 4  ;;  %s117_s6 = int_to_ptr.vmem [resolvable:$true] %s116_s6  ;;  %s131_s27 = int_to_ptr.vmem [resolvable:$true] %s130_s27 }
  0x85   :  { %s3156_s10 = scalar_lea.hbm %s4381_s11, 32 }
  0x86   :  { %p3157_p6 = scmp.ne.s32.totalorder %s4381_s11, %s3156_s10  ;;  %p3160_p7 = scmp.lt.u32.totalorder %s3156_s10, %s4381_s11 }
  0x88   :  { %p3162_p8 = pnand %p3160_p7, %p3157_p6 }
  0x8a   :  { %3165 = shalt.err (!%p3162_p8)
}
  0x8b   :  { %s3166_s9 = scalar_lea.vmem %s117_s6, 32  ;;  %p3171_p10 = scmp.lt.s32.totalorder %s117_s6, %s117_s6 }
  0x8c   :  { %p3167_p9 = scmp.ne.s32.totalorder %s117_s6, %s3166_s9  ;;  %p3172_p11 = scmp.lt.s32.totalorder %s3166_s9, %s3166_s9 }
  0x8e   :  { %p3173_p12 = por %p3172_p11, %p3171_p10 }
  0x90   :  { %p3174_p13 = pnand %p3173_p12, %p3167_p9 }
  0x92   :  { %3177 = shalt.err (!%p3174_p13)
}
  0x93   :  { %119 = dma.hbm_to_vmem [thread:$0]  %s4381_s11, 32, %s117_s6, [#allocation12]  }
  0x94   :  { %s3178_s1 = scalar_lea.hbm %s4384_s14, 64 }
  0x95   :  { %p3179_p0 = scmp.ne.s32.totalorder %s4384_s14, %s3178_s1  ;;  %p3182_p1 = scmp.lt.u32.totalorder %s3178_s1, %s4384_s14 }
  0x97   :  { %p3184_p2 = pnand %p3182_p1, %p3179_p0 }
  0x99   :  { %3187 = shalt.err (!%p3184_p2)
}
  0x9a   :  { %s3188_s24 = scalar_lea.vmem %s131_s27, 64  ;;  %p3193_p4 = scmp.lt.s32.totalorder %s131_s27, %s131_s27 }
  0x9b   :  { %p3189_p3 = scmp.ne.s32.totalorder %s131_s27, %s3188_s24  ;;  %p3194_p5 = scmp.lt.s32.totalorder %s3188_s24, %s3188_s24 }
  0x9d   :  { %p3195_p6 = por %p3194_p5, %p3193_p4 }
  0x9f   :  { %p3196_p7 = pnand %p3195_p6, %p3189_p3 }
  0xa1   :  { %3199 = shalt.err (!%p3196_p7)
}
  0xa2   :  { %133 = dma.hbm_to_vmem [thread:$0]  %s4384_s14, 64, %s131_s27, [#allocation15]  }
  0xa3   :  { %3222 = dma.done.wait [#allocation3], 256  }
  0xa4   :  { %3223 = vsyncadd [#allocation3], 4294967040 }
  0xa5   :  { %3224 = dma.done.wait [#allocation6], 64  }
  0xa6   :  { %3225 = vsyncadd [#allocation6], 4294967232 }
  0xa7   :  { %3226 = dma.done.wait [#allocation9], 8224  }
  0xa8   :  { %3227 = vsyncadd [#allocation9], 4294959072 }
  0xa9   :  { %3228 = dma.done.wait [#allocation12], 8224  }
  0xaa   :  { %3229 = vsyncadd [#allocation12], 4294959072 }
  0xab   :  { %3230 = dma.done.wait [#allocation15], 64  }
  0xac   :  { %3231 = vsyncadd [#allocation15], 4294967232  ;;  %v3246_v0 = vmov 0.0   ;;  %s4415_s30 = sld [smem:[#allocation27_spill]]  ;;  %v174_v7 = vld [vmem:[#allocation2] sm:$0xff]  ;;  %s4416_s29 = sld [smem:[#allocation29_spill]] }
  0xad   :  { %263 = vmatprep.mubr.f32.mxu0 %v3246_v0  ;;  %vm192_vm0 = vcmask 130048   ;;  %v175_v25 = vld [vmem:[#allocation2 + $0x8] sm:$0xff]  ;;  %vm967_vm1 = vcmask 1043456   ;;  %s4417_s4 = sld [smem:[#allocation23_spill]]  ;;  %s4418_s10 = sld [smem:[#allocation24_spill]]  ;;  %vm877_vm2 = vcmask 64512  }
  0xae   :  { %s4419_s14 = sld [smem:[#allocation25_spill]]  ;;  %vm960_vm3 = vcmask 31744  }
  0xb2   :  { %v177_v1 = vld [vmem:[%s4415_s30 + $0x8] sm:$0xff]  ;;  %v179_v2 = vld [vmem:[%s4415_s30 + $0x18] sm:$0xff]  ;;  %v176_v3 = vld [vmem:[%s4415_s30] sm:$0xff] }
  0xb3   :  { %v2617_v4 = vpack.c.bf16 %v179_v2, %v177_v1  ;;  %v178_v5 = vld [vmem:[%s4415_s30 + $0x10] sm:$0xff]  ;;  %v281_v8 = vld [vmem:[%s4416_s29 + $0x8] sm:$0xff]  ;;  %v283_v9 = vld [vmem:[%s4416_s29 + $0x18] sm:$0xff] }
  0xb4   :  { %v2619_v6 = vpack.c.bf16 %v178_v5, %v176_v3  ;;  %v280_v10 = vld [vmem:[%s4416_s29] sm:$0xff]  ;;  %v2621_v11 = vpack.c.bf16 %v283_v9, %v281_v8  ;;  %v282_v12 = vld [vmem:[%s4416_s29 + $0x10] sm:$0xff]  ;;  %v285_v13 = vld [vmem:[%s4416_s29 + $0x28] sm:$0xff] }
  0xb5   :  { %2618 = vmatprep.subr.bf16.mxu0 %v2617_v4  ;;  %v287_v14 = vld [vmem:[%s4416_s29 + $0x38] sm:$0xff]  ;;  %v2623_v15 = vpack.c.bf16 %v282_v12, %v280_v10  ;;  %v284_v17 = vld [vmem:[%s4416_s29 + $0x20] sm:$0xff]  ;;  %v286_v18 = vld [vmem:[%s4416_s29 + $0x30] sm:$0xff] }
  0xb6   :  { %2620 = vmatpush1.bf16.msra.mxu0 %v2619_v6  ;;  %v2625_v16 = vpack.c.bf16 %v287_v14, %v285_v13  ;;  %v289_v19 = vld [vmem:[%s4416_s29 + $0x48] sm:$0xff]  ;;  %2622 = vmatprep.subr.bf16.mxu1 %v2621_v11  ;;  %v291_v20 = vld [vmem:[%s4416_s29 + $0x58] sm:$0xff]  ;;  %v2627_v21 = vpack.c.bf16 %v286_v18, %v284_v17  ;;  %v288_v23 = vld [vmem:[%s4416_s29 + $0x40] sm:$0xff] }
  0xb7   :  { %2624 = vmatpush1.bf16.msra.mxu1 %v2623_v15  ;;  %v2629_v22 = vpack.c.bf16 %v291_v20, %v289_v19  ;;  %v290_v24 = vld [vmem:[%s4416_s29 + $0x50] sm:$0xff]  ;;  %v293_v26 = vld [vmem:[%s4416_s29 + $0x68] sm:$0xff]  ;;  %v295_v27 = vld [vmem:[%s4416_s29 + $0x78] sm:$0xff] }
  0xb8   :  { %2626 = vmatprep.subr.bf16.mxu1 %v2625_v16  ;;  %v2631_v28 = vpack.c.bf16 %v290_v24, %v288_v23  ;;  %v2633_v29 = vpack.c.bf16 %v295_v27, %v293_v26  ;;  %v292_v30 = vld [vmem:[%s4416_s29 + $0x60] sm:$0xff]  ;;  %v294_v31 = vld [vmem:[%s4416_s29 + $0x70] sm:$0xff]  ;;  %v297_v32 = vld [vmem:[%s4416_s29 + $0x88] sm:$0xff] }
  0xb9   :  { %2242 = vmatmul.mubr.msk.f32.vlgmr.msra.gmra.mrb[0].mxu0 %vm192_vm0, %v174_v7  ;;  %v299_v33 = vld [vmem:[%s4416_s29 + $0x98] sm:$0xff]  ;;  %v2635_v34 = vpack.c.bf16 %v294_v31, %v292_v30  ;;  %v296_v36 = vld [vmem:[%s4416_s29 + $0x80] sm:$0xff]  ;;  %v298_v37 = vld [vmem:[%s4416_s29 + $0x90] sm:$0xff] }
  0xba   :  { %269 = vmatprep.mubr.f32.mxu0 %v3246_v0  ;;  %v2637_v35 = vpack.c.bf16 %v299_v33, %v297_v32  ;;  %v301_v38 = vld [vmem:[%s4416_s29 + $0xa8] sm:$0xff]  ;;  %v303_v39 = vld [vmem:[%s4416_s29 + $0xb8] sm:$0xff]  ;;  %v2639_v40 = vpack.c.bf16 %v298_v37, %v296_v36  ;;  %v300_v42 = vld [vmem:[%s4416_s29 + $0xa0] sm:$0xff] }
  0xbb   :  { %2628 = vmatpush1.bf16.msra.mxu1 %v2627_v21  ;;  %v2641_v41 = vpack.c.bf16 %v303_v39, %v301_v38  ;;  %v302_v43 = vld [vmem:[%s4416_s29 + $0xb0] sm:$0xff]  ;;  %v305_v44 = vld [vmem:[%s4416_s29 + $0xc8] sm:$0xff]  ;;  %v307_v45 = vld [vmem:[%s4416_s29 + $0xd8] sm:$0xff] }
  0xbc   :  { %2630 = vmatprep.subr.bf16.mxu1 %v2629_v22  ;;  %v2643_v46 = vpack.c.bf16 %v302_v43, %v300_v42  ;;  %v2645_v47 = vpack.c.bf16 %v307_v45, %v305_v44  ;;  %v304_v48 = vld [vmem:[%s4416_s29 + $0xc0] sm:$0xff]  ;;  %v306_v49 = vld [vmem:[%s4416_s29 + $0xd0] sm:$0xff]  ;;  %v309_v50 = vld [vmem:[%s4416_s29 + $0xe8] sm:$0xff] }
  0xbd   :  { %2243 = vmatmul.mubr.msk.f32.gmra.mrb[2].mxu0 %vm192_vm0, %v175_v25  ;;  %v311_v51 = vld [vmem:[%s4416_s29 + $0xf8] sm:$0xff]  ;;  %v2647_v52 = vpack.c.bf16 %v306_v49, %v304_v48  ;;  %v308_v54 = vld [vmem:[%s4416_s29 + $0xe0] sm:$0xff]  ;;  %v310_v55 = vld [vmem:[%s4416_s29 + $0xf0] sm:$0xff] }
  0xbe   :  { %v2649_v53 = vpack.c.bf16 %v311_v51, %v309_v50  ;;  %v313_v56 = vld [vmem:[%s4416_s29 + $0x108] sm:$0xff]  ;;  %v315_v57 = vld [vmem:[%s4416_s29 + $0x118] sm:$0xff]  ;;  %v2651_v58 = vpack.c.bf16 %v310_v55, %v308_v54  ;;  %v312_v60 = vld [vmem:[%s4416_s29 + $0x100] sm:$0xff] }
  0xbf   :  { %2632 = vmatpush1.bf16.msra.mxu1 %v2631_v28  ;;  %v2653_v59 = vpack.c.bf16 %v315_v57, %v313_v56  ;;  %v314_v61 = vld [vmem:[%s4416_s29 + $0x110] sm:$0xff]  ;;  %v317_v62 = vld [vmem:[%s4416_s29 + $0x128] sm:$0xff]  ;;  %v319_v63 = vld [vmem:[%s4416_s29 + $0x138] sm:$0xff] }
  0xc0   :  { %2634 = vmatprep.subr.bf16.mxu1 %v2633_v29  ;;  %v2655_v0 = vpack.c.bf16 %v314_v61, %v312_v60  ;;  %v2657_v1 = vpack.c.bf16 %v319_v63, %v317_v62  ;;  %v316_v2 = vld [vmem:[%s4416_s29 + $0x120] sm:$0xff]  ;;  %v318_v3 = vld [vmem:[%s4416_s29 + $0x130] sm:$0xff]  ;;  %v321_v4 = vld [vmem:[%s4416_s29 + $0x148] sm:$0xff] }
  0xc1   :  { %v323_v5 = vld [vmem:[%s4416_s29 + $0x158] sm:$0xff]  ;;  %v2659_v6 = vpack.c.bf16 %v318_v3, %v316_v2  ;;  %v320_v8 = vld [vmem:[%s4416_s29 + $0x140] sm:$0xff]  ;;  %v322_v9 = vld [vmem:[%s4416_s29 + $0x150] sm:$0xff] }
  0xc2   :  { %v2661_v7 = vpack.c.bf16 %v323_v5, %v321_v4  ;;  %v325_v10 = vld [vmem:[%s4416_s29 + $0x168] sm:$0xff]  ;;  %v327_v11 = vld [vmem:[%s4416_s29 + $0x178] sm:$0xff]  ;;  %v2663_v12 = vpack.c.bf16 %v322_v9, %v320_v8  ;;  %v324_v14 = vld [vmem:[%s4416_s29 + $0x160] sm:$0xff] }
  0xc3   :  { %2636 = vmatpush1.bf16.msra.mxu1 %v2635_v34  ;;  %v2665_v13 = vpack.c.bf16 %v327_v11, %v325_v10  ;;  %v326_v15 = vld [vmem:[%s4416_s29 + $0x170] sm:$0xff]  ;;  %v329_v16 = vld [vmem:[%s4416_s29 + $0x188] sm:$0xff]  ;;  %v331_v17 = vld [vmem:[%s4416_s29 + $0x198] sm:$0xff] }
  0xc4   :  { %2638 = vmatprep.subr.bf16.mxu1 %v2637_v35  ;;  %v2667_v18 = vpack.c.bf16 %v326_v15, %v324_v14  ;;  %v2669_v19 = vpack.c.bf16 %v331_v17, %v329_v16  ;;  %v328_v20 = vld [vmem:[%s4416_s29 + $0x180] sm:$0xff]  ;;  %v330_v21 = vld [vmem:[%s4416_s29 + $0x190] sm:$0xff]  ;;  %v333_v22 = vld [vmem:[%s4416_s29 + $0x1a8] sm:$0xff] }
  0xc5   :  { %v335_v23 = vld [vmem:[%s4416_s29 + $0x1b8] sm:$0xff]  ;;  %v2671_v24 = vpack.c.bf16 %v330_v21, %v328_v20  ;;  %v332_v26 = vld [vmem:[%s4416_s29 + $0x1a0] sm:$0xff]  ;;  %v334_v27 = vld [vmem:[%s4416_s29 + $0x1b0] sm:$0xff] }
  0xc6   :  { %v2673_v25 = vpack.c.bf16 %v335_v23, %v333_v22  ;;  %v337_v28 = vld [vmem:[%s4416_s29 + $0x1c8] sm:$0xff]  ;;  %v339_v29 = vld [vmem:[%s4416_s29 + $0x1d8] sm:$0xff]  ;;  %v2675_v30 = vpack.c.bf16 %v334_v27, %v332_v26  ;;  %v336_v32 = vld [vmem:[%s4416_s29 + $0x1c0] sm:$0xff] }
  0xc7   :  { %2640 = vmatpush1.bf16.msra.mxu1 %v2639_v40  ;;  %v2677_v31 = vpack.c.bf16 %v339_v29, %v337_v28  ;;  %v338_v33 = vld [vmem:[%s4416_s29 + $0x1d0] sm:$0xff]  ;;  %v341_v35 = vld [vmem:[%s4416_s29 + $0x1e8] sm:$0xff]  ;;  %v343_v36 = vld [vmem:[%s4416_s29 + $0x1f8] sm:$0xff] }
  0xc8   :  { %2642 = vmatprep.subr.bf16.mxu1 %v2641_v41  ;;  %v2679_v34 = vpack.c.bf16 %v338_v33, %v336_v32  ;;  %v2681_v37 = vpack.c.bf16 %v343_v36, %v341_v35  ;;  %v340_v38 = vld [vmem:[%s4416_s29 + $0x1e0] sm:$0xff]  ;;  %v342_v39 = vld [vmem:[%s4416_s29 + $0x1f0] sm:$0xff] }
  0xc9   :  { %v2683_v40 = vpack.c.bf16 %v342_v39, %v340_v38  ;;  %v438_v41 = vld [vmem:[#allocation8 + $0x8] sm:$0xff]  ;;  %v440_v42 = vld [vmem:[#allocation8 + $0x18] sm:$0xff]  ;;  %v437_v43 = vld [vmem:[#allocation8] sm:$0xff] }
  0xca   :  { %v2685_v44 = vpack.c.bf16 %v440_v42, %v438_v41  ;;  %v439_v45 = vld [vmem:[#allocation8 + $0x10] sm:$0xff]  ;;  %v441_v50 = vld [vmem:[#allocation8 + $0x20] sm:$0xff]  ;;  %v478_v36 = vld [vmem:[#allocation8 + $0x148] sm:$0xff] }
  0xcb   :  { %2644 = vmatpush1.bf16.msra.mxu1 %v2643_v46  ;;  %v442_v46 = vld [vmem:[#allocation8 + $0x28] sm:$0xff]  ;;  %v2687_v48 = vpack.c.bf16 %v439_v45, %v437_v43  ;;  %v443_v51 = vld [vmem:[#allocation8 + $0x30] sm:$0xff]  ;;  %v445_v56 = vld [vmem:[#allocation8 + $0x40] sm:$0xff] }
  0xcc   :  { %2646 = vmatprep.subr.bf16.mxu1 %v2645_v47  ;;  %v444_v47 = vld [vmem:[#allocation8 + $0x38] sm:$0xff]  ;;  %2686 = vmatprep.subr.bf16.mxu0 %v2685_v44  ;;  %v2691_v54 = vpack.c.bf16 %v443_v51, %v441_v50  ;;  %v447_v57 = vld [vmem:[#allocation8 + $0x50] sm:$0xff]  ;;  %v449_v62 = vld [vmem:[#allocation8 + $0x60] sm:$0xff] }
  0xcd   :  { %v2689_v49 = vpack.c.bf16 %v444_v47, %v442_v46  ;;  %2688 = vmatpush1.bf16.msra.mxu0 %v2687_v48  ;;  %v2695_v60 = vpack.c.bf16 %v447_v57, %v445_v56  ;;  %v451_v63 = vld [vmem:[#allocation8 + $0x70] sm:$0xff]  ;;  %v453_v4 = vld [vmem:[#allocation8 + $0x80] sm:$0xff]  ;;  %v482_v42 = vld [vmem:[#allocation8 + $0x168] sm:$0xff] }
  0xce   :  { %v2699_v2 = vpack.c.bf16 %v451_v63, %v449_v62  ;;  %v455_v5 = vld [vmem:[#allocation8 + $0x90] sm:$0xff]  ;;  %v457_v10 = vld [vmem:[#allocation8 + $0xa0] sm:$0xff]  ;;  %v484_v43 = vld [vmem:[#allocation8 + $0x178] sm:$0xff] }
  0xcf   :  { %2648 = vmatpush1.bf16.msra.mxu1 %v2647_v52  ;;  %v446_v52 = vld [vmem:[#allocation8 + $0x48] sm:$0xff]  ;;  %2690 = vmatprep.subr.bf16.mxu0 %v2689_v49  ;;  %v2703_v8 = vpack.c.bf16 %v455_v5, %v453_v4  ;;  %v459_v11 = vld [vmem:[#allocation8 + $0xb0] sm:$0xff]  ;;  %v461_v16 = vld [vmem:[#allocation8 + $0xc0] sm:$0xff]  ;;  %v2729_v45 = vpack.c.bf16 %v484_v43, %v482_v42 }
  0xd0   :  { %2650 = vmatprep.subr.bf16.mxu1 %v2649_v53  ;;  %v448_v53 = vld [vmem:[#allocation8 + $0x58] sm:$0xff]  ;;  %v2707_v14 = vpack.c.bf16 %v459_v11, %v457_v10  ;;  %v463_v17 = vld [vmem:[#allocation8 + $0xd0] sm:$0xff]  ;;  %v465_v22 = vld [vmem:[#allocation8 + $0xe0] sm:$0xff] }
  0xd1   :  { %v2693_v55 = vpack.c.bf16 %v448_v53, %v446_v52  ;;  %2692 = vmatpush1.bf16.msra.mxu0 %v2691_v54  ;;  %v2711_v20 = vpack.c.bf16 %v463_v17, %v461_v16  ;;  %v467_v23 = vld [vmem:[#allocation8 + $0xf0] sm:$0xff]  ;;  %v469_v28 = vld [vmem:[#allocation8 + $0x100] sm:$0xff]  ;;  %v486_v48 = vld [vmem:[#allocation8 + $0x188] sm:$0xff] }
  0xd2   :  { %v2715_v26 = vpack.c.bf16 %v467_v23, %v465_v22  ;;  %v471_v29 = vld [vmem:[#allocation8 + $0x110] sm:$0xff]  ;;  %v481_v46 = vld [vmem:[#allocation8 + $0x160] sm:$0xff]  ;;  %v488_v49 = vld [vmem:[#allocation8 + $0x198] sm:$0xff] }
  0xd3   :  { %2652 = vmatpush1.bf16.msra.mxu1 %v2651_v58  ;;  %v450_v58 = vld [vmem:[#allocation8 + $0x68] sm:$0xff]  ;;  %2694 = vmatprep.subr.bf16.mxu0 %v2693_v55  ;;  %v2719_v32 = vpack.c.bf16 %v471_v29, %v469_v28  ;;  %v475_v35 = vld [vmem:[#allocation8 + $0x130] sm:$0xff]  ;;  %v2733_v51 = vpack.c.bf16 %v488_v49, %v486_v48  ;;  %v485_v52 = vld [vmem:[#allocation8 + $0x180] sm:$0xff] }
  0xd4   :  { %2654 = vmatprep.subr.bf16.mxu1 %v2653_v59  ;;  %v452_v59 = vld [vmem:[#allocation8 + $0x78] sm:$0xff]  ;;  %v479_v41 = vld [vmem:[#allocation8 + $0x150] sm:$0xff]  ;;  %v490_v54 = vld [vmem:[#allocation8 + $0x1a8] sm:$0xff] }
  0xd5   :  { %v2697_v61 = vpack.c.bf16 %v452_v59, %v450_v58  ;;  %2696 = vmatpush1.bf16.msra.mxu0 %v2695_v60  ;;  %v483_v47 = vld [vmem:[#allocation8 + $0x170] sm:$0xff]  ;;  %v492_v55 = vld [vmem:[#allocation8 + $0x1b8] sm:$0xff]  ;;  %v489_v58 = vld [vmem:[#allocation8 + $0x1a0] sm:$0xff] }
  0xd6   :  { %v2731_v50 = vpack.c.bf16 %v483_v47, %v481_v46  ;;  %v487_v53 = vld [vmem:[#allocation8 + $0x190] sm:$0xff]  ;;  %v2737_v57 = vpack.c.bf16 %v492_v55, %v490_v54  ;;  %v494_v60 = vld [vmem:[#allocation8 + $0x1c8] sm:$0xff]  ;;  %v500_v23 = vld [vmem:[#allocation8 + $0x1f8] sm:$0xff] }
  0xd7   :  { %2656 = vmatpush1.bf16.msra.mxu1 %v2655_v0  ;;  %v454_v0 = vld [vmem:[#allocation8 + $0x88] sm:$0xff]  ;;  %2698 = vmatprep.subr.bf16.mxu0 %v2697_v61  ;;  %v2735_v56 = vpack.c.bf16 %v487_v53, %v485_v52  ;;  %v491_v59 = vld [vmem:[#allocation8 + $0x1b0] sm:$0xff]  ;;  %v496_v61 = vld [vmem:[#allocation8 + $0x1d8] sm:$0xff] }
  0xd8   :  { %2658 = vmatprep.subr.bf16.mxu1 %v2657_v1  ;;  %v456_v1 = vld [vmem:[#allocation8 + $0x98] sm:$0xff]  ;;  %v2739_v62 = vpack.c.bf16 %v491_v59, %v489_v58  ;;  %v2741_v63 = vpack.c.bf16 %v496_v61, %v494_v60  ;;  %v498_v22 = vld [vmem:[#allocation8 + $0x1e8] sm:$0xff] }
  0xd9   :  { %v2701_v3 = vpack.c.bf16 %v456_v1, %v454_v0  ;;  %2700 = vmatpush1.bf16.msra.mxu0 %v2699_v2  ;;  %v182_v0 = vlaneseq  ;;  %v595_v28 = vld [vmem:[#allocation11 + $0x8] sm:$0xff]  ;;  %v597_v29 = vld [vmem:[#allocation11 + $0x18] sm:$0xff]  ;;  %v602_v43 = vld [vmem:[#allocation11 + $0x40] sm:$0xff] }
  0xda   :  { %v609_v46 = vld [vmem:[#allocation11 + $0x78] sm:$0xff]  ;;  %v606_v49 = vld [vmem:[#allocation11 + $0x60] sm:$0xff] }
  0xdb   :  { %2660 = vmatpush1.bf16.msra.mxu1 %v2659_v6  ;;  %v458_v6 = vld [vmem:[#allocation8 + $0xa8] sm:$0xff]  ;;  %2702 = vmatprep.subr.bf16.mxu0 %v2701_v3  ;;  %v3686_v1 = vshrl.u32 %v182_v0, 7  ;;  %v180_v3 = vld [vmem:[#allocation5] sm:$0x3] }
  0xdc   :  { %2662 = vmatprep.subr.bf16.mxu1 %v2661_v7  ;;  %v460_v7 = vld [vmem:[#allocation8 + $0xb8] sm:$0xff]  ;;  %v610_v55 = vld [vmem:[#allocation11 + $0x80] sm:$0xff] }
  0xdd   :  { %v2705_v9 = vpack.c.bf16 %v460_v7, %v458_v6  ;;  %2704 = vmatpush1.bf16.msra.mxu0 %v2703_v8  ;;  %v3689_v2 = vsub.s32 0, %v3686_v1  ;;  %v3692_v4 = vsub.s32 1, %v3686_v1  ;;  %v613_v52 = vld [vmem:[#allocation11 + $0x98] sm:$0xff]  ;;  %v614_v61 = vld [vmem:[#allocation11 + $0xa0] sm:$0xff] }
  0xde   :  { %v617_v58 = vld [vmem:[#allocation11 + $0xb8] sm:$0xff] }
  0xdf   :  { %2664 = vmatpush1.bf16.msra.mxu1 %v2663_v12  ;;  %v462_v12 = vld [vmem:[#allocation8 + $0xc8] sm:$0xff]  ;;  %2706 = vmatprep.subr.bf16.mxu0 %v2705_v9  ;;  %v185_v5 = vrot.slane %v180_v3, %v3689_v2  ;;  %v189_v6 = vrot.slane %v180_v3, %v3692_v4  ;;  %v621_v3 = vld [vmem:[#allocation11 + $0xd8] sm:$0xff] }
  0xe0   :  { %2666 = vmatprep.subr.bf16.mxu1 %v2665_v13  ;;  %v464_v13 = vld [vmem:[#allocation8 + $0xd8] sm:$0xff] }
  0xe1   :  { %v2709_v15 = vpack.c.bf16 %v464_v13, %v462_v12  ;;  %2708 = vmatpush1.bf16.msra.mxu0 %v2707_v14 }
  0xe3   :  { %2668 = vmatpush1.bf16.msra.mxu1 %v2667_v18  ;;  %v466_v18 = vld [vmem:[#allocation8 + $0xe8] sm:$0xff]  ;;  %2710 = vmatprep.subr.bf16.mxu0 %v2709_v15 }
  0xe4   :  { %2670 = vmatprep.subr.bf16.mxu1 %v2669_v19  ;;  %v468_v19 = vld [vmem:[#allocation8 + $0xf8] sm:$0xff] }
  0xe5   :  { %v2713_v21 = vpack.c.bf16 %v468_v19, %v466_v18  ;;  %2712 = vmatpush1.bf16.msra.mxu0 %v2711_v20  ;;  %v493_v19 = vld [vmem:[#allocation8 + $0x1c0] sm:$0xff]  ;;  %v495_v20 = vld [vmem:[#allocation8 + $0x1d0] sm:$0xff] }
  0xe7   :  { %2672 = vmatpush1.bf16.msra.mxu1 %v2671_v24  ;;  %v470_v24 = vld [vmem:[#allocation8 + $0x108] sm:$0xff]  ;;  %2714 = vmatprep.subr.bf16.mxu0 %v2713_v21  ;;  %v2743_v21 = vpack.c.bf16 %v495_v20, %v493_v19  ;;  %v628_v20 = vld [vmem:[#allocation11 + $0x110] sm:$0xff] }
  0xe8   :  { %2674 = vmatprep.subr.bf16.mxu1 %v2673_v25  ;;  %v472_v25 = vld [vmem:[#allocation8 + $0x118] sm:$0xff]  ;;  %v626_v19 = vld [vmem:[#allocation11 + $0x100] sm:$0xff] }
  0xe9   :  { %v2717_v27 = vpack.c.bf16 %v472_v25, %v470_v24  ;;  %2716 = vmatpush1.bf16.msra.mxu0 %v2715_v26  ;;  %v2745_v24 = vpack.c.bf16 %v500_v23, %v498_v22  ;;  %v497_v25 = vld [vmem:[#allocation8 + $0x1e0] sm:$0xff]  ;;  %v499_v26 = vld [vmem:[#allocation8 + $0x1f0] sm:$0xff]  ;;  %v2783_v23 = vpack.c.bf16 %v628_v20, %v626_v19 }
  0xea   :  { %v633_v22 = vld [vmem:[#allocation11 + $0x138] sm:$0xff]  ;;  %v767_v19 = vld [vmem:[%s4382_s12 + $0x80] sm:$0xff] }
  0xeb   :  { %2676 = vmatpush1.bf16.msra.mxu1 %v2675_v30  ;;  %v474_v30 = vld [vmem:[#allocation8 + $0x128] sm:$0xff]  ;;  %2718 = vmatprep.subr.bf16.mxu0 %v2717_v27  ;;  %v2747_v27 = vpack.c.bf16 %v499_v26, %v497_v25  ;;  %v632_v26 = vld [vmem:[#allocation11 + $0x130] sm:$0xff] }
  0xec   :  { %2678 = vmatprep.subr.bf16.mxu1 %v2677_v31  ;;  %v476_v31 = vld [vmem:[#allocation8 + $0x138] sm:$0xff]  ;;  %v630_v25 = vld [vmem:[#allocation11 + $0x120] sm:$0xff] }
  0xed   :  { %v2721_v33 = vpack.c.bf16 %v476_v31, %v474_v30  ;;  %2720 = vmatpush1.bf16.msra.mxu0 %v2719_v32  ;;  %v594_v30 = vld [vmem:[#allocation11] sm:$0xff]  ;;  %v2749_v31 = vpack.c.bf16 %v597_v29, %v595_v28  ;;  %v596_v32 = vld [vmem:[#allocation11 + $0x10] sm:$0xff]  ;;  %v637_v28 = vld [vmem:[#allocation11 + $0x158] sm:$0xff]  ;;  %v2787_v29 = vpack.c.bf16 %v632_v26, %v630_v25 }
  0xee   :  { %v768_v20 = vld [vmem:[%s4382_s12 + $0x88] sm:$0xff]  ;;  %v770_v25 = vld [vmem:[%s4382_s12 + $0x98] sm:$0xff] }
  0xef   :  { %2680 = vmatpush1.bf16.msra.mxu1 %v2679_v34  ;;  %v473_v34 = vld [vmem:[#allocation8 + $0x120] sm:$0xff]  ;;  %2722 = vmatprep.subr.bf16.mxu0 %v2721_v33  ;;  %v599_v33 = vld [vmem:[#allocation11 + $0x28] sm:$0xff] }
  0xf0   :  { %2682 = vmatprep.subr.bf16.mxu1 %v2681_v37  ;;  %v480_v37 = vld [vmem:[#allocation8 + $0x158] sm:$0xff]  ;;  %v2723_v38 = vpack.c.bf16 %v475_v35, %v473_v34  ;;  %v2751_v35 = vpack.c.bf16 %v596_v32, %v594_v30 }
  0xf1   :  { %v2725_v39 = vpack.c.bf16 %v480_v37, %v478_v36  ;;  %v601_v34 = vld [vmem:[#allocation11 + $0x38] sm:$0xff]  ;;  %v598_v37 = vld [vmem:[#allocation11 + $0x20] sm:$0xff]  ;;  %v636_v32 = vld [vmem:[#allocation11 + $0x150] sm:$0xff] }
  0xf2   :  { %2724 = vmatpush1.bf16.msra.mxu0 %v2723_v38  ;;  %v2753_v36 = vpack.c.bf16 %v601_v34, %v599_v33  ;;  %v600_v38 = vld [vmem:[#allocation11 + $0x30] sm:$0xff]  ;;  %v639_v33 = vld [vmem:[#allocation11 + $0x168] sm:$0xff]  ;;  %v641_v34 = vld [vmem:[#allocation11 + $0x178] sm:$0xff] }
  0xf3   :  { %2684 = vmatpush1.bf16.msra.mxu1 %v2683_v40  ;;  %v477_v40 = vld [vmem:[#allocation8 + $0x140] sm:$0xff]  ;;  %2726 = vmatprep.subr.bf16.mxu0 %v2725_v39  ;;  %v603_v39 = vld [vmem:[#allocation11 + $0x48] sm:$0xff] }
  0xf4   :  { %v2727_v44 = vpack.c.bf16 %v479_v41, %v477_v40  ;;  %2750 = vmatprep.subr.bf16.mxu1 %v2749_v31  ;;  %v605_v40 = vld [vmem:[#allocation11 + $0x58] sm:$0xff]  ;;  %v2755_v41 = vpack.c.bf16 %v600_v38, %v598_v37  ;;  %v634_v31 = vld [vmem:[#allocation11 + $0x140] sm:$0xff]  ;;  %v640_v38 = vld [vmem:[#allocation11 + $0x170] sm:$0xff] }
  0xf5   :  { %v2757_v42 = vpack.c.bf16 %v605_v40, %v603_v39  ;;  %v638_v37 = vld [vmem:[#allocation11 + $0x160] sm:$0xff]  ;;  %v643_v39 = vld [vmem:[#allocation11 + $0x188] sm:$0xff]  ;;  %v645_v40 = vld [vmem:[#allocation11 + $0x198] sm:$0xff] }
  0xf6   :  { %2728 = vmatpush1.bf16.msra.mxu0 %v2727_v44  ;;  %v604_v44 = vld [vmem:[#allocation11 + $0x50] sm:$0xff] }
  0xf7   :  { %2730 = vmatprep.subr.bf16.mxu0 %v2729_v45  ;;  %v607_v45 = vld [vmem:[#allocation11 + $0x68] sm:$0xff]  ;;  %v2759_v47 = vpack.c.bf16 %v604_v44, %v602_v43  ;;  %v642_v43 = vld [vmem:[#allocation11 + $0x180] sm:$0xff]  ;;  %v644_v44 = vld [vmem:[#allocation11 + $0x190] sm:$0xff] }
  0xf8   :  { %v2761_v48 = vpack.c.bf16 %v609_v46, %v607_v45  ;;  %v647_v45 = vld [vmem:[#allocation11 + $0x1a8] sm:$0xff]  ;;  %v649_v46 = vld [vmem:[#allocation11 + $0x1b8] sm:$0xff] }
  0xfa   :  { %2732 = vmatpush1.bf16.msra.mxu0 %v2731_v50  ;;  %v608_v50 = vld [vmem:[#allocation11 + $0x70] sm:$0xff] }
  0xfb   :  { %2734 = vmatprep.subr.bf16.mxu0 %v2733_v51  ;;  %v611_v51 = vld [vmem:[#allocation11 + $0x88] sm:$0xff]  ;;  %v2763_v53 = vpack.c.bf16 %v608_v50, %v606_v49  ;;  %v646_v49 = vld [vmem:[#allocation11 + $0x1a0] sm:$0xff]  ;;  %v648_v50 = vld [vmem:[#allocation11 + $0x1b0] sm:$0xff] }
  0xfc   :  { %v2765_v54 = vpack.c.bf16 %v613_v52, %v611_v51  ;;  %v651_v51 = vld [vmem:[#allocation11 + $0x1c8] sm:$0xff]  ;;  %v653_v52 = vld [vmem:[#allocation11 + $0x1d8] sm:$0xff] }
  0xfe   :  { %2736 = vmatpush1.bf16.msra.mxu0 %v2735_v56  ;;  %v612_v56 = vld [vmem:[#allocation11 + $0x90] sm:$0xff] }
  0xff   :  { %2738 = vmatprep.subr.bf16.mxu0 %v2737_v57  ;;  %v615_v57 = vld [vmem:[#allocation11 + $0xa8] sm:$0xff]  ;;  %v2767_v59 = vpack.c.bf16 %v612_v56, %v610_v55  ;;  %v344_v55 = vld [vmem:[#allocation7] sm:$0x3] }
 0x100   :  { %v2769_v60 = vpack.c.bf16 %v617_v58, %v615_v57  ;;  %v349_v56 = vrot.slane %v344_v55, %v3689_v2  ;;  %v353_v57 = vrot.slane %v344_v55, %v3692_v4  ;;  %v780_v55 = vld [vmem:[%s4382_s12 + $0xe8] sm:$0xff] }
 0x102   :  { %2740 = vmatpush1.bf16.msra.mxu0 %v2739_v62  ;;  %v616_v62 = vld [vmem:[#allocation11 + $0xb0] sm:$0xff] }
 0x103   :  { %2742 = vmatprep.subr.bf16.mxu0 %v2741_v63  ;;  %v619_v63 = vld [vmem:[#allocation11 + $0xc8] sm:$0xff] }
 0x106   :  { %2744 = vmatpush1.bf16.msra.mxu0 %v2743_v21  ;;  %v631_v21 = vld [vmem:[#allocation11 + $0x128] sm:$0xff] }
 0x107   :  { %2746 = vmatprep.subr.bf16.mxu0 %v2745_v24  ;;  %v2785_v24 = vpack.c.bf16 %v633_v22, %v631_v21  ;;  %v751_v21 = vld [vmem:[%s4382_s12] sm:$0xff]  ;;  %v2813_v22 = vpack.c.bf16 %v768_v20, %v767_v19  ;;  %v765_v19 = vld [vmem:[%s4382_s12 + $0x70] sm:$0xff]  ;;  %v766_v20 = vld [vmem:[%s4382_s12 + $0x78] sm:$0xff] }
 0x10a   :  { %2748 = vmatpush1.bf16.msra.mxu0 %v2747_v27  ;;  %v635_v27 = vld [vmem:[#allocation11 + $0x148] sm:$0xff] }
 0x10b   :  { %v2789_v30 = vpack.c.bf16 %v637_v28, %v635_v27  ;;  %v753_v28 = vld [vmem:[%s4382_s12 + $0x10] sm:$0xff]  ;;  %2814 = vmatprep.subr.bf16.mxu0 %v2813_v22 }
 0x10c   :  { %v658_v22 = vld [vmem:[#allocation13] sm:$0x3] }
 0x18c   :  { %v265_v7 = vpop.f32.mrb[0].mxu0 }
 0x18d   :  { %v266_v8 = vadd.f32 %v265_v7, %v185_v5  ;;  %v267_v9 = vpop.f32.mrb[1].mxu0  ;;  %v618_v7 = vld [vmem:[#allocation11 + $0xc0] sm:$0xff] }
 0x18e   :  { %v268_v10 = vadd.f32 %v267_v9, %v189_v6  ;;  %v623_v9 = vld [vmem:[#allocation11 + $0xe8] sm:$0xff] }
 0x18f   :  { %v276_v13 = vmax.f32 %v266_v8, 0.0  ;;  %v620_v8 = vld [vmem:[#allocation11 + $0xd0] sm:$0xff] }
 0x190   :  { %v271_v11 = vpop.f32.mrb[2].mxu0  ;;  %v277_v12 = vmax.f32 %v268_v10, 0.0  ;;  %v625_v10 = vld [vmem:[#allocation11 + $0xf8] sm:$0xff] }
 0x191   :  { %v272_v14 = vadd.f32 %v271_v11, %v185_v5  ;;  %v273_v15 = vpop.f32.mrb[3].mxu0  ;;  %v2771_v5 = vpack.c.bf16 %v616_v62, %v614_v61  ;;  %v2775_v11 = vpack.c.bf16 %v620_v8, %v618_v7 }
 0x192   :  { %v274_v16 = vadd.f32 %v273_v15, %v189_v6  ;;  %420 = vmatprep.mubr.f32.mxu1 %v277_v12  ;;  %v2773_v6 = vpack.c.bf16 %v621_v3, %v619_v63  ;;  %v2777_v12 = vpack.c.bf16 %v625_v10, %v623_v9  ;;  %v627_v15 = vld [vmem:[#allocation11 + $0x108] sm:$0xff]  ;;  %v650_v10 = vld [vmem:[#allocation11 + $0x1c0] sm:$0xff] }
 0x193   :  { %421 = vmatmul.mubr.f32.vlgmr.msra.gmra.mrb[0].mxu1 %v276_v13  ;;  %v278_v18 = vmax.f32 %v272_v14, 0.0  ;;  %v622_v13 = vld [vmem:[#allocation11 + $0xe0] sm:$0xff]  ;;  %v624_v14 = vld [vmem:[#allocation11 + $0xf0] sm:$0xff] }
 0x194   :  { %v279_v17 = vmax.f32 %v274_v16, 0.0  ;;  %2752 = vmatpush1.bf16.msra.mxu1 %v2751_v35  ;;  %v629_v16 = vld [vmem:[#allocation11 + $0x118] sm:$0xff]  ;;  %v2791_v35 = vpack.c.bf16 %v636_v32, %v634_v31 }
 0x195   :  { %2754 = vmatprep.subr.bf16.mxu1 %v2753_v36  ;;  %v2793_v36 = vpack.c.bf16 %v641_v34, %v639_v33  ;;  %v772_v31 = vld [vmem:[%s4382_s12 + $0xa8] sm:$0xff]  ;;  %v755_v34 = vld [vmem:[%s4382_s12 + $0x20] sm:$0xff] }
 0x196   :  { %426 = vmatprep.mubr.f32.mxu1 %v279_v17  ;;  %v2779_v17 = vpack.c.bf16 %v624_v14, %v622_v13  ;;  %v655_v13 = vld [vmem:[#allocation11 + $0x1e8] sm:$0xff]  ;;  %v657_v14 = vld [vmem:[#allocation11 + $0x1f8] sm:$0xff] }
 0x197   :  { %427 = vmatmul.mubr.f32.gmra.mrb[2].mxu1 %v278_v18  ;;  %v2781_v18 = vpack.c.bf16 %v629_v16, %v627_v15  ;;  %v2809_v15 = vpack.c.bf16 %v657_v14, %v655_v13  ;;  %v654_v16 = vld [vmem:[#allocation11 + $0x1e0] sm:$0xff]  ;;  %v763_v13 = vld [vmem:[%s4382_s12 + $0x60] sm:$0xff]  ;;  %v764_v14 = vld [vmem:[%s4382_s12 + $0x68] sm:$0xff] }
 0x198   :  { %2756 = vmatpush1.bf16.msra.mxu1 %v2755_v41  ;;  %v2795_v41 = vpack.c.bf16 %v640_v38, %v638_v37  ;;  %v774_v37 = vld [vmem:[%s4382_s12 + $0xb8] sm:$0xff] }
 0x199   :  { %2758 = vmatprep.subr.bf16.mxu1 %v2757_v42  ;;  %v2797_v42 = vpack.c.bf16 %v645_v40, %v643_v39  ;;  %v757_v40 = vld [vmem:[%s4382_s12 + $0x30] sm:$0xff] }
 0x19c   :  { %2760 = vmatpush1.bf16.msra.mxu1 %v2759_v47  ;;  %v2799_v47 = vpack.c.bf16 %v644_v44, %v642_v43  ;;  %v776_v43 = vld [vmem:[%s4382_s12 + $0xc8] sm:$0xff] }
 0x19d   :  { %2762 = vmatprep.subr.bf16.mxu1 %v2761_v48  ;;  %v2801_v48 = vpack.c.bf16 %v649_v46, %v647_v45  ;;  %v759_v46 = vld [vmem:[%s4382_s12 + $0x40] sm:$0xff] }
 0x1a0   :  { %2764 = vmatpush1.bf16.msra.mxu1 %v2763_v53  ;;  %v2803_v53 = vpack.c.bf16 %v648_v50, %v646_v49  ;;  %v778_v49 = vld [vmem:[%s4382_s12 + $0xd8] sm:$0xff] }
 0x1a1   :  { %2766 = vmatprep.subr.bf16.mxu1 %v2765_v54  ;;  %v2805_v54 = vpack.c.bf16 %v653_v52, %v651_v51  ;;  %v761_v52 = vld [vmem:[%s4382_s12 + $0x50] sm:$0xff] }
 0x1a4   :  { %2768 = vmatpush1.bf16.msra.mxu1 %v2767_v59 }
 0x1a5   :  { %2770 = vmatprep.subr.bf16.mxu1 %v2769_v60 }
 0x1a8   :  { %2772 = vmatpush1.bf16.msra.mxu1 %v2771_v5 }
 0x1a9   :  { %2774 = vmatprep.subr.bf16.mxu1 %v2773_v6 }
 0x1ac   :  { %2776 = vmatpush1.bf16.msra.mxu1 %v2775_v11  ;;  %v652_v11 = vld [vmem:[#allocation11 + $0x1d0] sm:$0xff] }
 0x1ad   :  { %2778 = vmatprep.subr.bf16.mxu1 %v2777_v12  ;;  %v2807_v12 = vpack.c.bf16 %v652_v11, %v650_v10 }
 0x1b0   :  { %2780 = vmatpush1.bf16.msra.mxu1 %v2779_v17  ;;  %v656_v17 = vld [vmem:[#allocation11 + $0x1f0] sm:$0xff] }
 0x1b1   :  { %2782 = vmatprep.subr.bf16.mxu1 %v2781_v18  ;;  %v2811_v18 = vpack.c.bf16 %v656_v17, %v654_v16  ;;  %v781_v16 = vld [vmem:[%s4382_s12 + $0xf0] sm:$0xff]  ;;  %v782_v17 = vld [vmem:[%s4382_s12 + $0xf8] sm:$0xff] }
 0x1b4   :  { %2784 = vmatpush1.bf16.msra.mxu1 %v2783_v23  ;;  %v752_v23 = vld [vmem:[%s4382_s12 + $0x8] sm:$0xff] }
 0x1b5   :  { %2786 = vmatprep.subr.bf16.mxu1 %v2785_v24  ;;  %v769_v24 = vld [vmem:[%s4382_s12 + $0x90] sm:$0xff]  ;;  %v2815_v26 = vpack.c.bf16 %v752_v23, %v751_v21  ;;  %v2843_v21 = vpack.c.bf16 %v766_v20, %v765_v19  ;;  %v663_v23 = vrot.slane %v658_v22, %v3689_v2  ;;  %v2011_v19 = vld [vmem:[%s4418_s10 + $0x98] sm:$0xff]  ;;  %v2012_v20 = vld [vmem:[%s4418_s10 + $0xa0] sm:$0xff] }
 0x1b6   :  { %v2817_v27 = vpack.c.bf16 %v770_v25, %v769_v24  ;;  %v667_v24 = vrot.slane %v658_v22, %v3692_v4 }
 0x1b8   :  { %2788 = vmatpush1.bf16.msra.mxu1 %v2787_v29  ;;  %v754_v29 = vld [vmem:[%s4382_s12 + $0x18] sm:$0xff] }
 0x1b9   :  { %2790 = vmatprep.subr.bf16.mxu1 %v2789_v30  ;;  %v771_v30 = vld [vmem:[%s4382_s12 + $0xa0] sm:$0xff]  ;;  %v2819_v32 = vpack.c.bf16 %v754_v29, %v753_v28 }
 0x1ba   :  { %v2821_v33 = vpack.c.bf16 %v772_v31, %v771_v30 }
 0x1bc   :  { %2792 = vmatpush1.bf16.msra.mxu1 %v2791_v35  ;;  %v756_v35 = vld [vmem:[%s4382_s12 + $0x28] sm:$0xff] }
 0x1bd   :  { %2794 = vmatprep.subr.bf16.mxu1 %v2793_v36  ;;  %v773_v36 = vld [vmem:[%s4382_s12 + $0xb0] sm:$0xff]  ;;  %v2823_v38 = vpack.c.bf16 %v756_v35, %v755_v34 }
 0x1be   :  { %v2825_v39 = vpack.c.bf16 %v774_v37, %v773_v36  ;;  %v3247_v37 = vmov 0  }
 0x1bf   :  { %2972 = vset.pattern.permute.xlu0 %v3247_v37  ;;  %2973 = vset.pattern.permute.xlu1 %v3247_v37  ;;  %v1247_v37 = vld [vmem:[%s4387_s17 + $0x18] sm:$0xff] }
 0x1c0   :  { %2796 = vmatpush1.bf16.msra.mxu1 %v2795_v41  ;;  %v758_v41 = vld [vmem:[%s4382_s12 + $0x38] sm:$0xff] }
 0x1c1   :  { %2798 = vmatprep.subr.bf16.mxu1 %v2797_v42  ;;  %v775_v42 = vld [vmem:[%s4382_s12 + $0xc0] sm:$0xff]  ;;  %v2827_v44 = vpack.c.bf16 %v758_v41, %v757_v40  ;;  %v1047_v40 = vld [vmem:[%s4417_s4 + $0x8] sm:$0xff]  ;;  %v1049_v41 = vld [vmem:[%s4417_s4 + $0x18] sm:$0xff] }
 0x1c2   :  { %v2829_v45 = vpack.c.bf16 %v776_v43, %v775_v42  ;;  %v1050_v42 = vld [vmem:[%s4417_s4 + $0x20] sm:$0xff]  ;;  %v1051_v43 = vld [vmem:[%s4417_s4 + $0x28] sm:$0xff] }
 0x1c4   :  { %2800 = vmatpush1.bf16.msra.mxu1 %v2799_v47  ;;  %v760_v47 = vld [vmem:[%s4382_s12 + $0x48] sm:$0xff] }
 0x1c5   :  { %2802 = vmatprep.subr.bf16.mxu1 %v2801_v48  ;;  %v777_v48 = vld [vmem:[%s4382_s12 + $0xd0] sm:$0xff]  ;;  %v2831_v50 = vpack.c.bf16 %v760_v47, %v759_v46  ;;  %v1054_v46 = vld [vmem:[%s4417_s4 + $0x40] sm:$0xff]  ;;  %v1055_v47 = vld [vmem:[%s4417_s4 + $0x48] sm:$0xff] }
 0x1c6   :  { %v2833_v51 = vpack.c.bf16 %v778_v49, %v777_v48  ;;  %v1056_v48 = vld [vmem:[%s4417_s4 + $0x50] sm:$0xff]  ;;  %v1057_v49 = vld [vmem:[%s4417_s4 + $0x58] sm:$0xff] }
 0x1c8   :  { %2804 = vmatpush1.bf16.msra.mxu1 %v2803_v53  ;;  %v762_v53 = vld [vmem:[%s4382_s12 + $0x58] sm:$0xff] }
 0x1c9   :  { %2806 = vmatprep.subr.bf16.mxu1 %v2805_v54  ;;  %v779_v54 = vld [vmem:[%s4382_s12 + $0xe0] sm:$0xff] }
 0x1cc   :  { %2808 = vmatpush1.bf16.msra.mxu1 %v2807_v12 }
 0x1cd   :  { %2810 = vmatprep.subr.bf16.mxu1 %v2809_v15  ;;  %v2839_v15 = vpack.c.bf16 %v764_v14, %v763_v13  ;;  %v2005_v13 = vld [vmem:[%s4418_s10 + $0x68] sm:$0xff]  ;;  %v2006_v14 = vld [vmem:[%s4418_s10 + $0x70] sm:$0xff] }
 0x1d0   :  { %2812 = vmatpush1.bf16.msra.mxu1 %v2811_v18  ;;  %v2841_v18 = vpack.c.bf16 %v782_v17, %v781_v16  ;;  %v2008_v16 = vld [vmem:[%s4418_s10 + $0x80] sm:$0xff]  ;;  %v2009_v17 = vld [vmem:[%s4418_s10 + $0x88] sm:$0xff] }
 0x266   :  { %v422_v58 = vpop.f32.mrb[0].mxu1 }
 0x267   :  { %v423_v59 = vadd.f32 %v422_v58, %v349_v56  ;;  %v424_v60 = vpop.f32.mrb[1].mxu1  ;;  %v501_v58 = vld [vmem:[#allocation10] sm:$0x3] }
 0x268   :  { %v425_v61 = vadd.f32 %v424_v60, %v353_v57  ;;  %v510_v60 = vrot.slane %v501_v58, %v3692_v4  ;;  %v3801_v4 = vld [vmem:[#allocation14] sm:$0xf] }
 0x269   :  { %v433_v3 = vmax.f32 %v423_v59, 0.0  ;;  %v506_v59 = vrot.slane %v501_v58, %v3689_v2  ;;  %v869_v2 = vld [vmem:[%s4385_s15] sm:$0xff] }
 0x26a   :  { %v434_v62 = vmax.f32 %v425_v61, 0.0  ;;  %v428_v63 = vpop.f32.mrb[2].mxu1  ;;  %v1066_v58 = vld [vmem:[%s4417_s4 + $0xa0] sm:$0xff] }
 0x26b   :  { %v429_v5 = vadd.f32 %v428_v63, %v349_v56  ;;  %v430_v6 = vpop.f32.mrb[3].mxu1  ;;  %v2835_v56 = vpack.c.bf16 %v762_v53, %v761_v52  ;;  %v1060_v52 = vld [vmem:[%s4417_s4 + $0x70] sm:$0xff]  ;;  %v1061_v53 = vld [vmem:[%s4417_s4 + $0x78] sm:$0xff] }
 0x26c   :  { %v431_v7 = vadd.f32 %v430_v6, %v353_v57  ;;  %577 = vmatprep.mubr.f32.mxu0 %v434_v62  ;;  %v2837_v57 = vpack.c.bf16 %v780_v55, %v779_v54  ;;  %v1062_v54 = vld [vmem:[%s4417_s4 + $0x80] sm:$0xff]  ;;  %v1063_v55 = vld [vmem:[%s4417_s4 + $0x88] sm:$0xff] }
 0x26d   :  { %578 = vmatmul.mubr.f32.vlgmr.msra.gmra.mrb[4].mxu0 %v433_v3  ;;  %v435_v9 = vmax.f32 %v429_v5, 0.0 }
 0x26e   :  { %v436_v8 = vmax.f32 %v431_v7, 0.0  ;;  %2816 = vmatpush3.bf16.msra.mxu0 %v2815_v26 }
 0x26f   :  { %2818 = vmatprep.subr.bf16.mxu0 %v2817_v27 }
 0x270   :  { %583 = vmatprep.mubr.f32.mxu0 %v436_v8 }
 0x271   :  { %584 = vmatmul.mubr.f32.gmra.mrb[6].mxu0 %v435_v9 }
 0x272   :  { %2820 = vmatpush3.bf16.msra.mxu0 %v2819_v32 }
 0x273   :  { %2822 = vmatprep.subr.bf16.mxu0 %v2821_v33 }
 0x276   :  { %2824 = vmatpush3.bf16.msra.mxu0 %v2823_v38  ;;  %v1046_v38 = vld [vmem:[%s4417_s4] sm:$0xff] }
 0x277   :  { %2826 = vmatprep.subr.bf16.mxu0 %v2825_v39  ;;  %1070 = vperm.xlu0 %2972, %v1046_v38   ;;  %v1048_v39 = vld [vmem:[%s4417_s4 + $0x10] sm:$0xff]  ;;  %v868_v38 = vld [vmem:[%s4419_s14 + $0x8] sm:$0xff] }
 0x278   :  { %1080 = vperm.xlu1 %2973, %v1048_v39  }
 0x27a   :  { %2828 = vmatpush3.bf16.msra.mxu0 %v2827_v44  ;;  %v1052_v44 = vld [vmem:[%s4417_s4 + $0x30] sm:$0xff] }
 0x27b   :  { %2830 = vmatprep.subr.bf16.mxu0 %v2829_v45  ;;  %1075 = vperm.xlu0 %2972, %v1047_v40   ;;  %v1053_v45 = vld [vmem:[%s4417_s4 + $0x38] sm:$0xff]  ;;  %v1248_v40 = vld [vmem:[%s4387_s17 + $0x20] sm:$0xff] }
 0x27c   :  { %1085 = vperm.xlu1 %2973, %v1049_v41   ;;  %v1249_v41 = vld [vmem:[%s4387_s17 + $0x28] sm:$0xff] }
 0x27e   :  { %2832 = vmatpush3.bf16.msra.mxu0 %v2831_v50  ;;  %v1058_v50 = vld [vmem:[%s4417_s4 + $0x60] sm:$0xff] }
 0x27f   :  { %2834 = vmatprep.subr.bf16.mxu0 %v2833_v51  ;;  %1090 = vperm.xlu0 %2972, %v1050_v42   ;;  %v1059_v51 = vld [vmem:[%s4417_s4 + $0x68] sm:$0xff]  ;;  %v1250_v42 = vld [vmem:[%s4387_s17 + $0x30] sm:$0xff] }
 0x280   :  { %1095 = vperm.xlu1 %2973, %v1051_v43   ;;  %v1251_v43 = vld [vmem:[%s4387_s17 + $0x38] sm:$0xff] }
 0x282   :  { %2836 = vmatpush3.bf16.msra.mxu0 %v2835_v56  ;;  %v1064_v56 = vld [vmem:[%s4417_s4 + $0x90] sm:$0xff] }
 0x283   :  { %2838 = vmatprep.subr.bf16.mxu0 %v2837_v57  ;;  %1100 = vperm.xlu0 %2972, %v1052_v44   ;;  %v1065_v57 = vld [vmem:[%s4417_s4 + $0x98] sm:$0xff]  ;;  %v2857_v44 = vpack.c.bf16 %v1251_v43, %v1250_v42 }
 0x284   :  { %1105 = vperm.xlu1 %2973, %v1053_v45   ;;  %v1252_v45 = vld [vmem:[%s4387_s17 + $0x40] sm:$0xff] }
 0x286   :  { %2840 = vmatpush3.bf16.msra.mxu0 %v2839_v15  ;;  %v2007_v15 = vld [vmem:[%s4418_s10 + $0x78] sm:$0xff] }
 0x287   :  { %2842 = vmatprep.subr.bf16.mxu0 %v2841_v18  ;;  %1110 = vperm.xlu0 %2972, %v1054_v46   ;;  %v2010_v18 = vld [vmem:[%s4418_s10 + $0x90] sm:$0xff]  ;;  %v1253_v46 = vld [vmem:[%s4387_s17 + $0x48] sm:$0xff] }
 0x288   :  { %1115 = vperm.xlu1 %2973, %v1055_v47   ;;  %v2861_v47 = vpack.c.bf16 %v1253_v46, %v1252_v45 }
 0x28a   :  { %2844 = vmatpush3.bf16.msra.mxu0 %v2843_v21  ;;  %v2013_v21 = vld [vmem:[%s4418_s10 + $0xa8] sm:$0xff] }
 0x28b   :  { %2412 = vmatprep.subr.mxu0 %v869_v2  ;;  %1120 = vperm.xlu0 %2972, %v1056_v48   ;;  %v1254_v48 = vld [vmem:[%s4387_s17 + $0x50] sm:$0xff] }
 0x28c   :  { %1125 = vperm.xlu1 %2973, %v1057_v49   ;;  %v1255_v49 = vld [vmem:[%s4387_s17 + $0x58] sm:$0xff] }
 0x28f   :  { %1130 = vperm.xlu0 %2972, %v1058_v50   ;;  %v2865_v50 = vpack.c.bf16 %v1255_v49, %v1254_v48 }
 0x290   :  { %1135 = vperm.xlu1 %2973, %v1059_v51   ;;  %v1256_v51 = vld [vmem:[%s4387_s17 + $0x60] sm:$0xff] }
 0x293   :  { %1140 = vperm.xlu0 %2972, %v1060_v52   ;;  %v1257_v52 = vld [vmem:[%s4387_s17 + $0x68] sm:$0xff] }
 0x294   :  { %1145 = vperm.xlu1 %2973, %v1061_v53   ;;  %v2869_v53 = vpack.c.bf16 %v1257_v52, %v1256_v51 }
 0x297   :  { %1150 = vperm.xlu0 %2972, %v1062_v54   ;;  %v1258_v54 = vld [vmem:[%s4387_s17 + $0x70] sm:$0xff] }
 0x298   :  { %1155 = vperm.xlu1 %2973, %v1063_v55   ;;  %v1259_v55 = vld [vmem:[%s4387_s17 + $0x78] sm:$0xff] }
 0x29b   :  { %1160 = vperm.xlu0 %2972, %v1064_v56   ;;  %v2873_v56 = vpack.c.bf16 %v1259_v55, %v1258_v54 }
 0x29c   :  { %1165 = vperm.xlu1 %2973, %v1065_v57   ;;  %v1464_v57 = vld [vmem:[%s4389_s19] sm:$0xff] }
 0x29f   :  { %1170 = vperm.xlu0 %2972, %v1066_v58   ;;  %v1465_v58 = vld [vmem:[%s4389_s19 + $0x8] sm:$0xff] }
 0x340   :  { %v579_v61 = vpop.f32.mrb[4].mxu0 }
 0x341   :  { %v580_v62 = vadd.f32 %v579_v61, %v506_v59  ;;  %v581_v63 = vpop.f32.mrb[5].mxu0  ;;  %v1993_v61 = vld [vmem:[%s4418_s10 + $0x8] sm:$0xff] }
 0x342   :  { %v582_v3 = vadd.f32 %v581_v63, %v510_v60  ;;  %v1995_v63 = vld [vmem:[%s4418_s10 + $0x18] sm:$0xff] }
 0x343   :  { %v590_v7 = vmax.f32 %v580_v62, 0.0  ;;  %v1994_v62 = vld [vmem:[%s4418_s10 + $0x10] sm:$0xff] }
 0x344   :  { %v591_v5 = vmax.f32 %v582_v3, 0.0  ;;  %v585_v6 = vpop.f32.mrb[6].mxu0  ;;  %v1996_v3 = vld [vmem:[%s4418_s10 + $0x20] sm:$0xff] }
 0x345   :  { %v586_v8 = vadd.f32 %v585_v6, %v506_v59  ;;  %v587_v9 = vpop.f32.mrb[7].mxu0  ;;  %v1067_v59 = vld [vmem:[%s4417_s4 + $0xa8] sm:$0xff]  ;;  %v1998_v6 = vld [vmem:[%s4418_s10 + $0x30] sm:$0xff] }
 0x346   :  { %v588_v10 = vadd.f32 %v587_v9, %v510_v60  ;;  %734 = vmatprep.mubr.f32.mxu1 %v591_v5  ;;  %v1992_v60 = vld [vmem:[%s4418_s10] sm:$0xff]  ;;  %1175 = vperm.xlu1 %2973, %v1067_v59   ;;  %v1997_v5 = vld [vmem:[%s4418_s10 + $0x28] sm:$0xff]  ;;  %v1466_v59 = vld [vmem:[%s4389_s19 + $0x10] sm:$0xff] }
 0x347   :  { %735 = vmatmul.mubr.f32.vlgmr.msra.gmra.mrb[4].mxu1 %v590_v7  ;;  %v592_v12 = vmax.f32 %v586_v8, 0.0  ;;  %2016 = vperm.xlu0 %2972, %v1992_v60   ;;  %v1999_v7 = vld [vmem:[%s4418_s10 + $0x38] sm:$0xff]  ;;  %v2000_v8 = vld [vmem:[%s4418_s10 + $0x40] sm:$0xff]  ;;  %v2001_v9 = vld [vmem:[%s4418_s10 + $0x48] sm:$0xff]  ;;  %v2877_v60 = vpack.c.bf16 %v1465_v58, %v1464_v57 }
 0x348   :  { %v593_v11 = vmax.f32 %v588_v10, 0.0  ;;  %v2002_v10 = vld [vmem:[%s4418_s10 + $0x50] sm:$0xff] }
 0x349   :  { %2878 = vmatprep.subr.bf16.mxu1 %v2877_v60 }
 0x34a   :  { %740 = vmatprep.mubr.f32.mxu1 %v593_v11  ;;  %2021 = vperm.xlu1 %2973, %v1993_v61   ;;  %v2003_v11 = vld [vmem:[%s4418_s10 + $0x58] sm:$0xff] }
 0x34b   :  { %741 = vmatmul.mubr.f32.gmra.mrb[6].mxu1 %v592_v12  ;;  %2026 = vperm.xlu0 %2972, %v1994_v62   ;;  %v2004_v12 = vld [vmem:[%s4418_s10 + $0x60] sm:$0xff]  ;;  %v1467_v61 = vld [vmem:[%s4389_s19 + $0x18] sm:$0xff] }
 0x34c   :  { %v2881_v62 = vpack.c.bf16 %v1467_v61, %v1466_v59  ;;  %2880 = vmatpush3.bf16.msra.mxu1 %v2877_v60 }
 0x34e   :  { %2031 = vperm.xlu1 %2973, %v1995_v63   ;;  %v1468_v63 = vld [vmem:[%s4389_s19 + $0x20] sm:$0xff]  ;;  %2882 = vmatprep.subr.bf16.mxu1 %v2881_v62 }
 0x34f   :  { %2036 = vperm.xlu0 %2972, %v1996_v3   ;;  %v1469_v3 = vld [vmem:[%s4389_s19 + $0x28] sm:$0xff] }
 0x350   :  { %2884 = vmatpush3.bf16.msra.mxu1 %v2881_v62 }
 0x352   :  { %2041 = vperm.xlu1 %2973, %v1997_v5   ;;  %v2885_v5 = vpack.c.bf16 %v1469_v3, %v1468_v63 }
 0x353   :  { %2046 = vperm.xlu0 %2972, %v1998_v6   ;;  %v1470_v6 = vld [vmem:[%s4389_s19 + $0x30] sm:$0xff] }
 0x354   :  { %2886 = vmatprep.subr.bf16.mxu1 %v2885_v5 }
 0x355   :  { %2888 = vmatpush3.bf16.msra.mxu1 %v2885_v5 }
 0x356   :  { %2051 = vperm.xlu1 %2973, %v1999_v7   ;;  %v1471_v7 = vld [vmem:[%s4389_s19 + $0x38] sm:$0xff] }
 0x357   :  { %2056 = vperm.xlu0 %2972, %v2000_v8   ;;  %v2889_v8 = vpack.c.bf16 %v1471_v7, %v1470_v6 }
 0x359   :  { %2890 = vmatprep.subr.bf16.mxu1 %v2889_v8 }
 0x35a   :  { %2061 = vperm.xlu1 %2973, %v2001_v9   ;;  %v1472_v9 = vld [vmem:[%s4389_s19 + $0x40] sm:$0xff]  ;;  %2892 = vmatpush3.bf16.msra.mxu1 %v2889_v8 }
 0x35b   :  { %2066 = vperm.xlu0 %2972, %v2002_v10   ;;  %v1473_v10 = vld [vmem:[%s4389_s19 + $0x48] sm:$0xff] }
 0x35e   :  { %2071 = vperm.xlu1 %2973, %v2003_v11   ;;  %v2893_v11 = vpack.c.bf16 %v1473_v10, %v1472_v9 }
 0x35f   :  { %2076 = vperm.xlu0 %2972, %v2004_v12   ;;  %v1474_v12 = vld [vmem:[%s4389_s19 + $0x50] sm:$0xff] }
 0x360   :  { %2894 = vmatprep.subr.bf16.mxu1 %v2893_v11 }
 0x361   :  { %2896 = vmatpush3.bf16.msra.mxu1 %v2893_v11 }
 0x362   :  { %2081 = vperm.xlu1 %2973, %v2005_v13   ;;  %v1475_v13 = vld [vmem:[%s4389_s19 + $0x58] sm:$0xff] }
 0x363   :  { %2086 = vperm.xlu0 %2972, %v2006_v14   ;;  %v2897_v14 = vpack.c.bf16 %v1475_v13, %v1474_v12 }
 0x365   :  { %2898 = vmatprep.subr.bf16.mxu1 %v2897_v14 }
 0x366   :  { %2091 = vperm.xlu1 %2973, %v2007_v15   ;;  %v1476_v15 = vld [vmem:[%s4389_s19 + $0x60] sm:$0xff]  ;;  %2900 = vmatpush3.bf16.msra.mxu1 %v2897_v14 }
 0x367   :  { %2096 = vperm.xlu0 %2972, %v2008_v16   ;;  %v1477_v16 = vld [vmem:[%s4389_s19 + $0x68] sm:$0xff] }
 0x36a   :  { %2101 = vperm.xlu1 %2973, %v2009_v17   ;;  %v2901_v17 = vpack.c.bf16 %v1477_v16, %v1476_v15 }
 0x36b   :  { %2106 = vperm.xlu0 %2972, %v2010_v18   ;;  %v1071_v18 = vpop.permute.xlu0 %1070 }
 0x36c   :  { %2902 = vmatprep.subr.bf16.mxu1 %v2901_v17 }
 0x36d   :  { %2904 = vmatpush3.bf16.msra.mxu1 %v2901_v17 }
 0x36e   :  { %2111 = vperm.xlu1 %2973, %v2011_v19   ;;  %v1081_v19 = vpop.permute.xlu1 %1080 }
 0x36f   :  { %2116 = vperm.xlu0 %2972, %v2012_v20   ;;  %v1076_v20 = vpop.permute.xlu0 %1075 }
 0x372   :  { %2121 = vperm.xlu1 %2973, %v2013_v21   ;;  %v1086_v21 = vpop.permute.xlu1 %1085 }
 0x41a   :  { %v736_v25 = vpop.f32.mrb[4].mxu1 }
 0x41b   :  { %v737_v26 = vadd.f32 %v736_v25, %v663_v23  ;;  %v738_v27 = vpop.f32.mrb[5].mxu1 }
 0x41c   :  { %v739_v28 = vadd.f32 %v738_v27, %v667_v24 }
 0x41d   :  { %v747_v31 = vmax.f32 %v737_v26, 0.0 }
 0x41e   :  { %v748_v29 = vmax.f32 %v739_v28, 0.0  ;;  %v742_v30 = vpop.f32.mrb[6].mxu1 }
 0x41f   :  { %v743_v32 = vadd.f32 %v742_v30, %v663_v23  ;;  %v744_v33 = vpop.f32.mrb[7].mxu1  ;;  %v2244_v23 = vld [vmem:[%s4383_s13] ss:$0 sm:$0xff] }
 0x420   :  { %v745_v34 = vadd.f32 %v744_v33, %v667_v24  ;;  %854 = vmatprep.mubr.f32.mxu0 %v748_v29 }
 0x421   :  { %855 = vmatmul.mubr.f32.vlgmr.msra.gmra.mrb[8].mxu0 %v747_v31  ;;  %v749_v36 = vmax.f32 %v743_v32, 0.0  ;;  %v1244_v31 = vld [vmem:[%s4387_s17] sm:$0xff]  ;;  %v1245_v32 = vld [vmem:[%s4387_s17 + $0x8] sm:$0xff] }
 0x422   :  { %v750_v35 = vmax.f32 %v745_v34, 0.0  ;;  %2413 = vmatpush3.msra.mxu0 %v869_v2  ;;  %v1246_v2 = vld [vmem:[%s4387_s17 + $0x10] sm:$0xff] }
 0x423   :  { %2417 = vmatprep.subr.msk.mxu0 %vm967_vm1, %v3801_v4  ;;  %v2849_v39 = vpack.c.bf16 %v1247_v37, %v1246_v2 }
 0x424   :  { %859 = vmatprep.mubr.f32.mxu0 %v750_v35  ;;  %v867_v35 = vld [vmem:[%s4419_s14] sm:$0xff] }
 0x425   :  { %860 = vmatmul.mubr.f32.gmra.mrb[10].mxu0 %v749_v36  ;;  %v2845_v36 = vpack.c.bf16 %v1245_v32, %v1244_v31 }
 0x4f4   :  { %v2286_v22 = vpop.f32.mrb[8].mxu0 }
 0x4f5   :  { %v2287_v24 = vpop.f32.mrb[9].mxu0 }
 0x4f6   :  { %v2288_v25 = vadd.f32 %v2287_v24, %v2286_v22  ;;  %v1091_v22 = vpop.permute.xlu0 %1090 }
 0x4f8   :  { %v857_v26 = vadd.f32 %v2288_v25, %v2244_v23  ;;  %v2289_v27 = vpop.f32.mrb[10].mxu0 }
 0x4f9   :  { %v2290_v28 = vpop.f32.mrb[11].mxu0 }
 0x4fa   :  { %v865_v29 = vmax.f32 %v857_v26, 0.0  ;;  %v2291_v30 = vadd.f32 %v2290_v28, %v2289_v27  ;;  %v1101_v24 = vpop.permute.xlu0 %1100 }
 0x4fc   :  { %v862_v33 = vadd.f32 %v2291_v30, %v2244_v23  ;;  %2414 = vmatprep.mubr.msk.f32.mxu0 %vm877_vm2, %v865_v29  ;;  %v1096_v23 = vpop.permute.xlu1 %1095 }
 0x4fe   :  { %v866_v34 = vmax.f32 %v862_v33, 0.0  ;;  %v1111_v26 = vpop.permute.xlu0 %1110 }
 0x500   :  { %2415 = vmatmul.mubr.msk.f32.vlgmr.msra.gmra.mrb[12].mxu0 %vm877_vm2, %v866_v34  ;;  %v1106_v25 = vpop.permute.xlu1 %1105 }
 0x501   :  { %2418 = vmatpush3.msk.msra.mxu0 %vm967_vm1, %v3801_v4  ;;  %2419 = vmatprep.mubr.msk.f32.mxu0 %vm960_vm3, %v867_v35  ;;  %v2853_v4 = vpack.c.bf16 %v1249_v41, %v1248_v40  ;;  %v2245_v35 = vld [vmem:[%s4386_s16] ss:$0 sm:$0xff] }
 0x502   :  { %2846 = vmatprep.subr.bf16.mxu0 %v2845_v36  ;;  %v1121_v28 = vpop.permute.xlu0 %1120 }
 0x504   :  { %2420 = vmatmul.mubr.msk.f32.vlgmr.msra.gmra.mrb[14].mxu0 %vm960_vm3, %v868_v38  ;;  %v1116_v27 = vpop.permute.xlu1 %1115 }
 0x505   :  { %2848 = vmatpush3.bf16.msra.mxu0 %v2845_v36 }
 0x506   :  { %2850 = vmatprep.subr.bf16.mxu0 %v2849_v39  ;;  %v1131_v30 = vpop.permute.xlu0 %1130 }
 0x508   :  { %v1126_v29 = vpop.permute.xlu1 %1125 }
 0x509   :  { %2852 = vmatpush3.bf16.msra.mxu0 %v2849_v39 }
 0x50a   :  { %2854 = vmatprep.subr.bf16.mxu0 %v2853_v4  ;;  %v1141_v32 = vpop.permute.xlu0 %1140 }
 0x50c   :  { %v1136_v31 = vpop.permute.xlu1 %1135 }
 0x50d   :  { %2856 = vmatpush3.bf16.msra.mxu0 %v2853_v4 }
 0x50e   :  { %2858 = vmatprep.subr.bf16.mxu0 %v2857_v44  ;;  %v1151_v2 = vpop.permute.xlu0 %1150 }
 0x510   :  { %v1146_v33 = vpop.permute.xlu1 %1145 }
 0x511   :  { %2860 = vmatpush3.bf16.msra.mxu0 %v2857_v44 }
 0x512   :  { %2862 = vmatprep.subr.bf16.mxu0 %v2861_v47  ;;  %v1161_v60 = vpop.permute.xlu0 %1160 }
 0x514   :  { %v1156_v40 = vpop.permute.xlu1 %1155 }
 0x515   :  { %2864 = vmatpush3.bf16.msra.mxu0 %v2861_v47 }
 0x516   :  { %2866 = vmatprep.subr.bf16.mxu0 %v2865_v50 }
 0x518   :  { %v1166_v61 = vpop.permute.xlu1 %1165 }
 0x519   :  { %2868 = vmatpush3.bf16.msra.mxu0 %v2865_v50 }
 0x51a   :  { %2870 = vmatprep.subr.bf16.mxu0 %v2869_v53 }
 0x51d   :  { %2872 = vmatpush3.bf16.msra.mxu0 %v2869_v53 }
 0x51e   :  { %2874 = vmatprep.subr.bf16.mxu0 %v2873_v56 }
 0x521   :  { %2876 = vmatpush3.bf16.msra.mxu0 %v2873_v56 }
 0x5d3   :  { %v2416_v34 = vpop.f32.mrb[12].mxu0 }
 0x5d4   :  { %v950_v36 = vpop.f32.mrb[13].mxu0  ;;  %v4043_v37 = vadd.f32 %v2416_v34, %v2245_v35 }
 0x5d5   :  { %v951_v38 = vadd.f32 %v2245_v35, %v950_v36 }
 0x5d7   :  { %v2421_v39 = vpop.f32.mrb[14].mxu0 }
 0x5d8   :  { %v1037_v41 = vpop.f32.mrb[15].mxu0  ;;  %v1179_v4 = vmul.f32 %v2421_v39, %v1076_v20  ;;  %v1181_v42 = vmul.f32 %v2421_v39, %v1086_v21  ;;  %v1183_v43 = vmul.f32 %v2421_v39, %v1096_v23  ;;  %v1185_v44 = vmul.f32 %v2421_v39, %v1106_v25  ;;  %v1171_v20 = vpop.permute.xlu0 %1170 }
 0x5d9   :  { %v1178_v45 = vmul.f32 %v1071_v18, %v1037_v41  ;;  %v1180_v46 = vmul.f32 %v1081_v19, %v1037_v41  ;;  %v1182_v47 = vmul.f32 %v1091_v22, %v1037_v41  ;;  %v1184_v48 = vmul.f32 %v1101_v24, %v1037_v41  ;;  %v1176_v21 = vpop.permute.xlu1 %1175 }
 0x5da   :  { %v1201_v49 = vadd.f32 %v1179_v4, %v4043_v37  ;;  %v1203_v50 = vadd.f32 %v1181_v42, %v4043_v37  ;;  %v1205_v51 = vadd.f32 %v1183_v43, %v4043_v37  ;;  %v1207_v52 = vadd.f32 %v1185_v44, %v4043_v37 }
 0x5db   :  { %v1200_v53 = vadd.f32 %v1178_v45, %v951_v38  ;;  %v1202_v54 = vadd.f32 %v1180_v46, %v951_v38  ;;  %v1204_v55 = vadd.f32 %v1182_v47, %v951_v38  ;;  %v1206_v56 = vadd.f32 %v1184_v48, %v951_v38 }
 0x5dc   :  { %v1223_v58 = vmax.f32 %v1201_v49, 0.0  ;;  %v1186_v62 = vmul.f32 %v1111_v26, %v1037_v41  ;;  %v1187_v63 = vmul.f32 %v2421_v39, %v1116_v27  ;;  %v1188_v3 = vmul.f32 %v1121_v28, %v1037_v41  ;;  %v1478_v49 = vld [vmem:[%s4389_s19 + $0x70] sm:$0xff] }
 0x5dd   :  { %v1222_v57 = vmax.f32 %v1200_v53, 0.0  ;;  %v1224_v59 = vmax.f32 %v1202_v54, 0.0  ;;  %v1189_v5 = vmul.f32 %v2421_v39, %v1126_v29  ;;  %v1190_v6 = vmul.f32 %v1131_v30, %v1037_v41  ;;  %v1685_v53 = vld [vmem:[%s4391_s21 + $0x8] sm:$0xff]  ;;  %v1686_v54 = vld [vmem:[%s4391_s21 + $0x10] sm:$0xff] }
 0x5de   :  { %v1191_v7 = vmul.f32 %v2421_v39, %v1136_v31  ;;  %v1192_v8 = vmul.f32 %v1141_v32, %v1037_v41  ;;  %v1193_v9 = vmul.f32 %v2421_v39, %v1146_v33  ;;  %v1208_v10 = vadd.f32 %v1186_v62, %v951_v38  ;;  %v1691_v62 = vld [vmem:[%s4391_s21 + $0x38] sm:$0xff] }
 0x5df   :  { %2454 = vmatprep.mubr.f32.mxu0 %v1222_v57  ;;  %v1209_v11 = vadd.f32 %v1187_v63, %v4043_v37  ;;  %v1210_v12 = vadd.f32 %v1188_v3, %v951_v38  ;;  %v1211_v13 = vadd.f32 %v1189_v5, %v4043_v37  ;;  %v1212_v14 = vadd.f32 %v1190_v6, %v951_v38  ;;  %v1692_v3 = vld [vmem:[%s4391_s21 + $0x40] sm:$0xff]  ;;  %v1693_v5 = vld [vmem:[%s4391_s21 + $0x48] sm:$0xff] }
 0x5e0   :  { %2455 = vmatmul.mubr.f32.vlgmr.msra.gmra.mrb[16].mxu0 %v1223_v58  ;;  %v1213_v15 = vadd.f32 %v1191_v7, %v4043_v37  ;;  %v1214_v16 = vadd.f32 %v1192_v8, %v951_v38  ;;  %v1215_v17 = vadd.f32 %v1193_v9, %v4043_v37  ;;  %v1225_v18 = vmax.f32 %v1203_v50, 0.0  ;;  %v1479_v50 = vld [vmem:[%s4389_s19 + $0x78] sm:$0xff]  ;;  %v1688_v58 = vld [vmem:[%s4391_s21 + $0x20] sm:$0xff]  ;;  %v1694_v7 = vld [vmem:[%s4391_s21 + $0x50] sm:$0xff] }
 0x5e1   :  { %2457 = vmatprep.mubr.f32.mxu0 %v1224_v59  ;;  %v1226_v19 = vmax.f32 %v1204_v55, 0.0  ;;  %v1194_v22 = vmul.f32 %v1151_v2, %v1037_v41  ;;  %v1195_v23 = vmul.f32 %v2421_v39, %v1156_v40  ;;  %v1196_v24 = vmul.f32 %v1161_v60, %v1037_v41  ;;  %v1689_v59 = vld [vmem:[%s4391_s21 + $0x28] sm:$0xff]  ;;  %v1695_v8 = vld [vmem:[%s4391_s21 + $0x58] sm:$0xff] }
 0x5e2   :  { %v1197_v25 = vmul.f32 %v2421_v39, %v1166_v61  ;;  %v1227_v26 = vmax.f32 %v1205_v51, 0.0  ;;  %v1198_v27 = vmul.f32 %v1171_v20, %v1037_v41  ;;  %v1199_v28 = vmul.f32 %v2421_v39, %v1176_v21  ;;  %v1690_v61 = vld [vmem:[%s4391_s21 + $0x30] sm:$0xff] }
 0x5e3   :  { %v1216_v29 = vadd.f32 %v1194_v22, %v951_v38  ;;  %v1217_v30 = vadd.f32 %v1195_v23, %v4043_v37  ;;  %v1218_v31 = vadd.f32 %v1196_v24, %v951_v38  ;;  %v1228_v33 = vmax.f32 %v1206_v56, 0.0  ;;  %v1687_v56 = vld [vmem:[%s4391_s21 + $0x18] sm:$0xff] }
 0x5e4   :  { %2458 = vmatmul.mubr.f32.gmra.mrb[18].mxu0 %v1225_v18  ;;  %v1219_v32 = vadd.f32 %v1197_v25, %v4043_v37  ;;  %v1220_v34 = vadd.f32 %v1198_v27, %v951_v38  ;;  %v1221_v35 = vadd.f32 %v1199_v28, %v4043_v37  ;;  %v1229_v36 = vmax.f32 %v1207_v52, 0.0  ;;  %v1684_v52 = vld [vmem:[%s4391_s21] sm:$0xff] }
 0x5e5   :  { %2460 = vmatprep.mubr.f32.mxu0 %v1226_v19  ;;  %v1230_v2 = vmax.f32 %v1208_v10, 0.0  ;;  %v1231_v40 = vmax.f32 %v1209_v11, 0.0  ;;  %v1232_v4 = vmax.f32 %v1210_v12, 0.0  ;;  %v1233_v39 = vmax.f32 %v1211_v13, 0.0  ;;  %v1696_v10 = vld [vmem:[%s4391_s21 + $0x60] sm:$0xff]  ;;  %v1697_v11 = vld [vmem:[%s4391_s21 + $0x68] sm:$0xff] }
 0x5e6   :  { %v1234_v41 = vmax.f32 %v1212_v14, 0.0  ;;  %v1235_v42 = vmax.f32 %v1213_v15, 0.0  ;;  %v1236_v43 = vmax.f32 %v1214_v16, 0.0  ;;  %v1237_v38 = vmax.f32 %v1215_v17, 0.0  ;;  %v4123_v13 = vld [vmem:[%s4388_s18] ss:$0 sm:$0xff] }
 0x5e7   :  { %v1238_v37 = vmax.f32 %v1216_v29, 0.0  ;;  %v1239_v44 = vmax.f32 %v1217_v30, 0.0  ;;  %v1240_v45 = vmax.f32 %v1218_v31, 0.0  ;;  %v1241_v46 = vmax.f32 %v1219_v32, 0.0 }
 0x5e8   :  { %2461 = vmatmul.mubr.f32.gmra.mrb[20].mxu0 %v1227_v26  ;;  %v1242_v47 = vmax.f32 %v1220_v34, 0.0  ;;  %v1243_v48 = vmax.f32 %v1221_v35, 0.0  ;;  %v2905_v51 = vpack.c.bf16 %v1479_v50, %v1478_v49  ;;  %v2909_v55 = vpack.c.bf16 %v1685_v53, %v1684_v52 }
 0x5e9   :  { %2463 = vmatprep.mubr.f32.mxu0 %v1228_v33  ;;  %v2913_v57 = vpack.c.bf16 %v1687_v56, %v1686_v54  ;;  %v2917_v60 = vpack.c.bf16 %v1689_v59, %v1688_v58  ;;  %v4086_v63 = vpack.c.bf16 %v1691_v62, %v1690_v61  ;;  %v4095_v6 = vpack.c.bf16 %v1693_v5, %v1692_v3 }
 0x5ea   :  { %2906 = vmatprep.subr.bf16.mxu1 %v2905_v51  ;;  %2910 = vmatprep.subr.bf16.mxu0 %v2909_v55  ;;  %v4105_v9 = vpack.c.bf16 %v1695_v8, %v1694_v7  ;;  %v4115_v12 = vpack.c.bf16 %v1697_v11, %v1696_v10 }
 0x5eb   :  { %2908 = vmatpush3.bf16.msra.mxu1 %v2905_v51  ;;  %2912 = vmatpush3.bf16.msra.mxu0 %v2909_v55 }
 0x5ec   :  { %2464 = vmatmul.mubr.f32.gmra.mrb[22].mxu0 %v1229_v36  ;;  %2941 = vmatprep.subr.bf16.mxu1 %v2909_v55 }
 0x5ed   :  { %2466 = vmatprep.mubr.f32.mxu0 %v1230_v2  ;;  %2914 = vmatprep.subr.bf16.mxu0 %v2913_v57 }
 0x5ef   :  { %2916 = vmatpush3.bf16.msra.mxu0 %v2913_v57 }
 0x5f0   :  { %2467 = vmatmul.mubr.f32.gmra.mrb[24].mxu0 %v1231_v40  ;;  %2918 = vmatprep.subr.bf16.mxu0 %v2917_v60 }
 0x5f1   :  { %2469 = vmatprep.mubr.f32.mxu0 %v1232_v4 }
 0x5f3   :  { %2920 = vmatpush3.bf16.msra.mxu0 %v2917_v60 }
 0x5f4   :  { %2470 = vmatmul.mubr.f32.gmra.mrb[26].mxu0 %v1233_v39  ;;  %2922 = vmatprep.subr.bf16.mxu0 %v4086_v63 }
 0x5f5   :  { %2472 = vmatprep.mubr.f32.mxu0 %v1234_v41 }
 0x5f7   :  { %2924 = vmatpush3.bf16.msra.mxu0 %v4086_v63 }
 0x5f8   :  { %2473 = vmatmul.mubr.f32.gmra.mrb[28].mxu0 %v1235_v42  ;;  %2926 = vmatprep.subr.bf16.mxu0 %v4095_v6 }
 0x5f9   :  { %2475 = vmatprep.mubr.f32.mxu0 %v1236_v43 }
 0x5fb   :  { %2928 = vmatpush3.bf16.msra.mxu0 %v4095_v6 }
 0x5fc   :  { %2476 = vmatmul.mubr.f32.gmra.mrb[30].mxu0 %v1237_v38  ;;  %2930 = vmatprep.subr.bf16.mxu0 %v4105_v9 }
 0x5fd   :  { %2478 = vmatprep.mubr.f32.mxu0 %v1238_v37 }
 0x5ff   :  { %2932 = vmatpush3.bf16.msra.mxu0 %v4105_v9 }
 0x600   :  { %2479 = vmatmul.mubr.f32.gmra.mrb[32].mxu0 %v1239_v44  ;;  %2934 = vmatprep.subr.bf16.mxu0 %v4115_v12 }
 0x601   :  { %2481 = vmatprep.mubr.f32.mxu0 %v1240_v45 }
 0x603   :  { %2936 = vmatpush3.bf16.msra.mxu0 %v4115_v12 }
 0x604   :  { %2482 = vmatmul.mubr.f32.gmra.mrb[34].mxu0 %v1241_v46 }
 0x605   :  { %2484 = vmatprep.mubr.f32.mxu0 %v1242_v47 }
 0x608   :  { %2485 = vmatmul.mubr.f32.gmra.mrb[36].mxu0 %v1243_v48 }
 0x6b3   :  { %v2456_v14 = vpop.f32.mrb[16].mxu0 }
 0x6b4   :  { %v1339_v15 = vadd.f32 %v2456_v14, %v4123_v13  ;;  %v1333_v16 = vpop.f32.mrb[17].mxu0 }
 0x6b5   :  { %v1334_v17 = vadd.f32 %v4123_v13, %v1333_v16 }
 0x6b6   :  { %v1443_v20 = vmax.f32 %v1339_v15, 0.0 }
 0x6b7   :  { %v1442_v18 = vmax.f32 %v1334_v17, 0.0  ;;  %v2459_v19 = vpop.f32.mrb[18].mxu0 }
 0x6b8   :  { %v1349_v21 = vadd.f32 %v2459_v19, %v4123_v13  ;;  %v1343_v22 = vpop.f32.mrb[19].mxu0  ;;  %v1698_v19 = vld [vmem:[%s4391_s21 + $0x70] sm:$0xff] }
 0x6b9   :  { %v1344_v23 = vadd.f32 %v4123_v13, %v1343_v22  ;;  %2519 = vmatprep.mubr.f32.mxu1 %v1442_v18 }
 0x6ba   :  { %2520 = vmatmul.mubr.f32.vlgmr.msra.gmra.mrb[8].mxu1 %v1443_v20  ;;  %v1445_v26 = vmax.f32 %v1349_v21, 0.0  ;;  %v1699_v20 = vld [vmem:[%s4391_s21 + $0x78] sm:$0xff] }
 0x6bb   :  { %v1444_v24 = vmax.f32 %v1344_v23, 0.0  ;;  %v2462_v25 = vpop.f32.mrb[20].mxu0  ;;  %2949 = vmatpush3.bf16.msra.mxu1 %v2909_v55  ;;  %v2937_v21 = vpack.c.bf16 %v1699_v20, %v1698_v19 }
 0x6bc   :  { %v1359_v27 = vadd.f32 %v2462_v25, %v4123_v13  ;;  %v1353_v28 = vpop.f32.mrb[21].mxu0  ;;  %2942 = vmatprep.subr.bf16.mxu1 %v2913_v57 }
 0x6bd   :  { %v1354_v29 = vadd.f32 %v4123_v13, %v1353_v28  ;;  %2522 = vmatprep.mubr.f32.mxu1 %v1444_v24  ;;  %2938 = vmatprep.subr.bf16.mxu0 %v2937_v21 }
 0x6be   :  { %2523 = vmatmul.mubr.f32.gmra.mrb[10].mxu1 %v1445_v26  ;;  %v1447_v32 = vmax.f32 %v1359_v27, 0.0  ;;  %2940 = vmatpush3.bf16.msra.mxu0 %v2937_v21 }
 0x6bf   :  { %v1446_v30 = vmax.f32 %v1354_v29, 0.0  ;;  %v2465_v31 = vpop.f32.mrb[22].mxu0  ;;  %2950 = vmatpush3.bf16.msra.mxu1 %v2913_v57 }
 0x6c0   :  { %v1369_v33 = vadd.f32 %v2465_v31, %v4123_v13  ;;  %v1363_v34 = vpop.f32.mrb[23].mxu0  ;;  %2943 = vmatprep.subr.bf16.mxu1 %v2917_v60 }
 0x6c1   :  { %v1364_v35 = vadd.f32 %v4123_v13, %v1363_v34  ;;  %2525 = vmatprep.mubr.f32.mxu1 %v1446_v30 }
 0x6c2   :  { %2526 = vmatmul.mubr.f32.gmra.mrb[12].mxu1 %v1447_v32  ;;  %v1449_v40 = vmax.f32 %v1369_v33, 0.0 }
 0x6c3   :  { %v1448_v36 = vmax.f32 %v1364_v35, 0.0  ;;  %v2468_v2 = vpop.f32.mrb[24].mxu0  ;;  %2951 = vmatpush3.bf16.msra.mxu1 %v2917_v60 }
 0x6c4   :  { %v1379_v4 = vadd.f32 %v2468_v2, %v4123_v13  ;;  %v1373_v39 = vpop.f32.mrb[25].mxu0  ;;  %2944 = vmatprep.subr.bf16.mxu1 %v4086_v63 }
 0x6c5   :  { %v1374_v41 = vadd.f32 %v4123_v13, %v1373_v39  ;;  %2528 = vmatprep.mubr.f32.mxu1 %v1448_v36 }
 0x6c6   :  { %2529 = vmatmul.mubr.f32.gmra.mrb[14].mxu1 %v1449_v40  ;;  %v1451_v38 = vmax.f32 %v1379_v4, 0.0 }
 0x6c7   :  { %v1450_v42 = vmax.f32 %v1374_v41, 0.0  ;;  %v2471_v43 = vpop.f32.mrb[26].mxu0  ;;  %2952 = vmatpush3.bf16.msra.mxu1 %v4086_v63 }
 0x6c8   :  { %v1389_v37 = vadd.f32 %v2471_v43, %v4123_v13  ;;  %v1383_v44 = vpop.f32.mrb[27].mxu0  ;;  %2945 = vmatprep.subr.bf16.mxu1 %v4095_v6 }
 0x6c9   :  { %v1384_v45 = vadd.f32 %v4123_v13, %v1383_v44  ;;  %2531 = vmatprep.mubr.f32.mxu1 %v1450_v42 }
 0x6ca   :  { %2532 = vmatmul.mubr.f32.gmra.mrb[16].mxu1 %v1451_v38  ;;  %v1453_v48 = vmax.f32 %v1389_v37, 0.0 }
 0x6cb   :  { %v1452_v46 = vmax.f32 %v1384_v45, 0.0  ;;  %v2474_v47 = vpop.f32.mrb[28].mxu0  ;;  %2953 = vmatpush3.bf16.msra.mxu1 %v4095_v6 }
 0x6cc   :  { %v1399_v49 = vadd.f32 %v2474_v47, %v4123_v13  ;;  %v1393_v50 = vpop.f32.mrb[29].mxu0  ;;  %2946 = vmatprep.subr.bf16.mxu1 %v4105_v9 }
 0x6cd   :  { %v1394_v51 = vadd.f32 %v4123_v13, %v1393_v50  ;;  %2534 = vmatprep.mubr.f32.mxu1 %v1452_v46 }
 0x6ce   :  { %2535 = vmatmul.mubr.f32.gmra.mrb[18].mxu1 %v1453_v48  ;;  %v1455_v54 = vmax.f32 %v1399_v49, 0.0 }
 0x6cf   :  { %v1454_v52 = vmax.f32 %v1394_v51, 0.0  ;;  %v2477_v53 = vpop.f32.mrb[30].mxu0  ;;  %2954 = vmatpush3.bf16.msra.mxu1 %v4105_v9 }
 0x6d0   :  { %v1409_v55 = vadd.f32 %v2477_v53, %v4123_v13  ;;  %v1403_v56 = vpop.f32.mrb[31].mxu0  ;;  %2947 = vmatprep.subr.bf16.mxu1 %v4115_v12 }
 0x6d1   :  { %v1404_v57 = vadd.f32 %v4123_v13, %v1403_v56  ;;  %2537 = vmatprep.mubr.f32.mxu1 %v1454_v52 }
 0x6d2   :  { %2538 = vmatmul.mubr.f32.gmra.mrb[20].mxu1 %v1455_v54  ;;  %v1457_v60 = vmax.f32 %v1409_v55, 0.0 }
 0x6d3   :  { %v1456_v58 = vmax.f32 %v1404_v57, 0.0  ;;  %v2480_v59 = vpop.f32.mrb[32].mxu0  ;;  %2955 = vmatpush3.bf16.msra.mxu1 %v4115_v12 }
 0x6d4   :  { %v1419_v61 = vadd.f32 %v2480_v59, %v4123_v13  ;;  %v1413_v62 = vpop.f32.mrb[33].mxu0  ;;  %2948 = vmatprep.subr.bf16.mxu1 %v2937_v21 }
 0x6d5   :  { %v1414_v63 = vadd.f32 %v4123_v13, %v1413_v62  ;;  %2540 = vmatprep.mubr.f32.mxu1 %v1456_v58 }
 0x6d6   :  { %2541 = vmatmul.mubr.f32.gmra.mrb[22].mxu1 %v1457_v60  ;;  %v1459_v6 = vmax.f32 %v1419_v61, 0.0 }
 0x6d7   :  { %v1458_v3 = vmax.f32 %v1414_v63, 0.0  ;;  %v2483_v5 = vpop.f32.mrb[34].mxu0  ;;  %2956 = vmatpush3.bf16.msra.mxu1 %v2937_v21 }
 0x6d8   :  { %v1429_v7 = vadd.f32 %v2483_v5, %v4123_v13  ;;  %v1423_v8 = vpop.f32.mrb[35].mxu0 }
 0x6d9   :  { %v1424_v9 = vadd.f32 %v4123_v13, %v1423_v8  ;;  %2543 = vmatprep.mubr.f32.mxu1 %v1458_v3 }
 0x6da   :  { %2544 = vmatmul.mubr.f32.gmra.mrb[24].mxu1 %v1459_v6  ;;  %v1461_v12 = vmax.f32 %v1429_v7, 0.0 }
 0x6db   :  { %v1460_v10 = vmax.f32 %v1424_v9, 0.0  ;;  %v2486_v11 = vpop.f32.mrb[36].mxu0 }
 0x6dc   :  { %v1439_v14 = vadd.f32 %v2486_v11, %v4123_v13  ;;  %v1433_v15 = vpop.f32.mrb[37].mxu0 }
 0x6dd   :  { %v1434_v16 = vadd.f32 %v4123_v13, %v1433_v15  ;;  %2546 = vmatprep.mubr.f32.mxu1 %v1460_v10  ;;  %v4164_v13 = vld [vmem:[%s4390_s20] ss:$0 sm:$0xff] }
 0x6de   :  { %2547 = vmatmul.mubr.f32.gmra.mrb[26].mxu1 %v1461_v12  ;;  %v1463_v18 = vmax.f32 %v1439_v14, 0.0 }
 0x6df   :  { %v1462_v17 = vmax.f32 %v1434_v16, 0.0 }
 0x6e1   :  { %2549 = vmatprep.mubr.f32.mxu1 %v1462_v17 }
 0x6e2   :  { %2550 = vmatmul.mubr.f32.gmra.mrb[28].mxu1 %v1463_v18 }
 0x78d   :  { %v2521_v22 = vpop.f32.mrb[8].mxu1 }
 0x78e   :  { %v1559_v23 = vadd.f32 %v2521_v22, %v4164_v13  ;;  %v1553_v24 = vpop.f32.mrb[9].mxu1 }
 0x78f   :  { %v1554_v25 = vadd.f32 %v4164_v13, %v1553_v24 }
 0x790   :  { %v1663_v28 = vmax.f32 %v1559_v23, 0.0 }
 0x791   :  { %v1662_v26 = vmax.f32 %v1554_v25, 0.0  ;;  %v2524_v27 = vpop.f32.mrb[10].mxu1 }
 0x792   :  { %v1569_v29 = vadd.f32 %v2524_v27, %v4164_v13  ;;  %v1563_v30 = vpop.f32.mrb[11].mxu1  ;;  %v4191_v27 = vld [vmem:[%s4392_s22] ss:$0 sm:$0xff] }
 0x793   :  { %v1564_v31 = vadd.f32 %v4164_v13, %v1563_v30  ;;  %2584 = vmatprep.mubr.f32.mxu0 %v1662_v26 }
 0x794   :  { %2585 = vmatmul.mubr.f32.vlgmr.msra.gmra.mrb[38].mxu0 %v1663_v28  ;;  %v1665_v34 = vmax.f32 %v1569_v29, 0.0  ;;  %v2022_v28 = vpop.permute.xlu1 %2021 }
 0x795   :  { %v1664_v32 = vmax.f32 %v1564_v31, 0.0  ;;  %v2527_v33 = vpop.f32.mrb[12].mxu1 }
 0x796   :  { %v1579_v35 = vadd.f32 %v2527_v33, %v4164_v13  ;;  %v1573_v36 = vpop.f32.mrb[13].mxu1 }
 0x797   :  { %v1574_v2 = vadd.f32 %v4164_v13, %v1573_v36  ;;  %2587 = vmatprep.mubr.f32.mxu0 %v1664_v32  ;;  %v2017_v32 = vpop.permute.xlu0 %2016 }
 0x798   :  { %2588 = vmatmul.mubr.f32.gmra.mrb[40].mxu0 %v1665_v34  ;;  %v1667_v39 = vmax.f32 %v1579_v35, 0.0  ;;  %v2032_v36 = vpop.permute.xlu1 %2031 }
 0x799   :  { %v1666_v40 = vmax.f32 %v1574_v2, 0.0  ;;  %v2530_v4 = vpop.f32.mrb[14].mxu1 }
 0x79a   :  { %v1589_v41 = vadd.f32 %v2530_v4, %v4164_v13  ;;  %v1583_v42 = vpop.f32.mrb[15].mxu1 }
 0x79b   :  { %v1584_v43 = vadd.f32 %v4164_v13, %v1583_v42  ;;  %2590 = vmatprep.mubr.f32.mxu0 %v1666_v40 }
 0x79c   :  { %2591 = vmatmul.mubr.f32.gmra.mrb[42].mxu0 %v1667_v39  ;;  %v1669_v44 = vmax.f32 %v1589_v41, 0.0  ;;  %v2027_v41 = vpop.permute.xlu0 %2026 }
 0x79d   :  { %v1668_v38 = vmax.f32 %v1584_v43, 0.0  ;;  %v2533_v37 = vpop.f32.mrb[16].mxu1 }
 0x79e   :  { %v1599_v45 = vadd.f32 %v2533_v37, %v4164_v13  ;;  %v1593_v46 = vpop.f32.mrb[17].mxu1 }
 0x79f   :  { %v1594_v47 = vadd.f32 %v4164_v13, %v1593_v46  ;;  %2593 = vmatprep.mubr.f32.mxu0 %v1668_v38 }
 0x7a0   :  { %2594 = vmatmul.mubr.f32.gmra.mrb[44].mxu0 %v1669_v44  ;;  %v1671_v50 = vmax.f32 %v1599_v45, 0.0  ;;  %v4203_v45 = vpop.permute.xlu1 %2041 }
 0x7a1   :  { %v1670_v48 = vmax.f32 %v1594_v47, 0.0  ;;  %v2536_v49 = vpop.f32.mrb[18].mxu1 }
 0x7a2   :  { %v1609_v51 = vadd.f32 %v2536_v49, %v4164_v13  ;;  %v1603_v52 = vpop.f32.mrb[19].mxu1 }
 0x7a3   :  { %v1604_v53 = vadd.f32 %v4164_v13, %v1603_v52  ;;  %2596 = vmatprep.mubr.f32.mxu0 %v1670_v48 }
 0x7a4   :  { %2597 = vmatmul.mubr.f32.gmra.mrb[46].mxu0 %v1671_v50  ;;  %v1673_v56 = vmax.f32 %v1609_v51, 0.0  ;;  %v2037_v51 = vpop.permute.xlu0 %2036 }
 0x7a5   :  { %v1672_v54 = vmax.f32 %v1604_v53, 0.0  ;;  %v2539_v55 = vpop.f32.mrb[20].mxu1 }
 0x7a6   :  { %v1619_v57 = vadd.f32 %v2539_v55, %v4164_v13  ;;  %v1613_v58 = vpop.f32.mrb[21].mxu1 }
 0x7a7   :  { %v1614_v59 = vadd.f32 %v4164_v13, %v1613_v58  ;;  %2599 = vmatprep.mubr.f32.mxu0 %v1672_v54 }
 0x7a8   :  { %2600 = vmatmul.mubr.f32.gmra.mrb[48].mxu0 %v1673_v56  ;;  %v1675_v62 = vmax.f32 %v1619_v57, 0.0 }
 0x7a9   :  { %v1674_v60 = vmax.f32 %v1614_v59, 0.0  ;;  %v2542_v61 = vpop.f32.mrb[22].mxu1 }
 0x7aa   :  { %v1629_v63 = vadd.f32 %v2542_v61, %v4164_v13  ;;  %v1623_v3 = vpop.f32.mrb[23].mxu1  ;;  %v4215_v61 = vpop.permute.xlu1 %2051 }
 0x7ab   :  { %v1624_v5 = vadd.f32 %v4164_v13, %v1623_v3  ;;  %2602 = vmatprep.mubr.f32.mxu0 %v1674_v60 }
 0x7ac   :  { %2603 = vmatmul.mubr.f32.gmra.mrb[50].mxu0 %v1675_v62  ;;  %v1677_v8 = vmax.f32 %v1629_v63, 0.0 }
 0x7ad   :  { %v1676_v6 = vmax.f32 %v1624_v5, 0.0  ;;  %v2545_v7 = vpop.f32.mrb[24].mxu1 }
 0x7ae   :  { %v1639_v9 = vadd.f32 %v2545_v7, %v4164_v13  ;;  %v1633_v10 = vpop.f32.mrb[25].mxu1 }
 0x7af   :  { %v1634_v11 = vadd.f32 %v4164_v13, %v1633_v10  ;;  %2605 = vmatprep.mubr.f32.mxu0 %v1676_v6 }
 0x7b0   :  { %2606 = vmatmul.mubr.f32.gmra.mrb[52].mxu0 %v1677_v8  ;;  %v1679_v15 = vmax.f32 %v1639_v9, 0.0 }
 0x7b1   :  { %v1678_v12 = vmax.f32 %v1634_v11, 0.0  ;;  %v2548_v14 = vpop.f32.mrb[26].mxu1 }
 0x7b2   :  { %v1649_v16 = vadd.f32 %v2548_v14, %v4164_v13  ;;  %v1643_v17 = vpop.f32.mrb[27].mxu1 }
 0x7b3   :  { %v1644_v18 = vadd.f32 %v4164_v13, %v1643_v17  ;;  %2608 = vmatprep.mubr.f32.mxu1 %v1678_v12  ;;  %v2047_v12 = vpop.permute.xlu0 %2046 }
 0x7b4   :  { %2609 = vmatmul.mubr.f32.vlgmr.msra.gmra.mrb[30].mxu1 %v1679_v15  ;;  %v1681_v21 = vmax.f32 %v1649_v16, 0.0 }
 0x7b5   :  { %v1680_v19 = vmax.f32 %v1644_v18, 0.0  ;;  %v2551_v20 = vpop.f32.mrb[28].mxu1 }
 0x7b6   :  { %v1659_v22 = vadd.f32 %v2551_v20, %v4164_v13  ;;  %v1653_v23 = vpop.f32.mrb[29].mxu1 }
 0x7b7   :  { %v1654_v24 = vadd.f32 %v4164_v13, %v1653_v23  ;;  %2611 = vmatprep.mubr.f32.mxu1 %v1680_v19 }
 0x7b8   :  { %2612 = vmatmul.mubr.f32.gmra.mrb[32].mxu1 %v1681_v21  ;;  %v1683_v26 = vmax.f32 %v1659_v22, 0.0 }
 0x7b9   :  { %v1682_v25 = vmax.f32 %v1654_v24, 0.0 }
 0x7bb   :  { %2614 = vmatprep.mubr.f32.mxu1 %v1682_v25 }
 0x7bc   :  { %2615 = vmatmul.mubr.f32.gmra.mrb[34].mxu1 %v1683_v26  ;;  %v2062_v26 = vpop.permute.xlu1 %2061 }
 0x867   :  { %v2586_v29 = vpop.f32.mrb[38].mxu0 }
 0x868   :  { %v1779_v30 = vadd.f32 %v2586_v29, %v4191_v27  ;;  %v1773_v31 = vpop.f32.mrb[39].mxu0 }
 0x869   :  { %v1774_v33 = vadd.f32 %v4191_v27, %v1773_v31 }
 0x86a   :  { %v1928_v13 = vmul.f32 1.442695, %v1779_v30  ;;  %v1905_v52 = vadd.f32 1.0, %v1779_v30  ;;  %vm1883_vm4 = vcmp.gt.f32.partialorder %v1779_v30, 0.0 }
 0x86b   :  { %v1926_v34 = vmul.f32 1.442695, %v1774_v33  ;;  %v2589_v35 = vpop.f32.mrb[40].mxu0  ;;  %v1904_v55 = vadd.f32 1.0, %v1774_v33  ;;  %vm1882_vm5 = vcmp.gt.f32.partialorder %v1774_v33, 0.0 }
 0x86c   :  { %2974 = vpow2.f32 %v1928_v13  ;;  %v1789_v2 = vadd.f32 %v2589_v35, %v4191_v27  ;;  %v1783_v40 = vpop.f32.mrb[41].mxu0 }
 0x86d   :  { %2976 = vpow2.f32 %v1926_v34  ;;  %v1784_v4 = vadd.f32 %v4191_v27, %v1783_v40 }
 0x86e   :  { %v1932_v39 = vmul.f32 1.442695, %v1789_v2  ;;  %vm1885_vm6 = vcmp.gt.f32.partialorder %v1789_v2, 0.0  ;;  %v1907_v5 = vadd.f32 1.0, %v1789_v2 }
 0x86f   :  { %v1930_v42 = vmul.f32 1.442695, %v1784_v4  ;;  %v2592_v43 = vpop.f32.mrb[42].mxu0  ;;  %vm1884_vm7 = vcmp.gt.f32.partialorder %v1784_v4, 0.0  ;;  %v1906_v9 = vadd.f32 1.0, %v1784_v4 }
 0x870   :  { %2978 = vpow2.f32 %v1932_v39  ;;  %v4198_v38 = vadd.f32 %v2592_v43, %v4191_v27  ;;  %v1793_v37 = vpop.f32.mrb[43].mxu0 }
 0x871   :  { %2980 = vpow2.f32 %v1930_v42  ;;  %v4201_v44 = vadd.f32 %v4191_v27, %v1793_v37 }
 0x872   :  { %v1936_v46 = vmul.f32 1.442695, %v4198_v38  ;;  %vm1887_vm8 = vcmp.gt.f32.partialorder %v4198_v38, 0.0  ;;  %v1909_v16 = vadd.f32 1.0, %v4198_v38 }
 0x873   :  { %v1934_v47 = vmul.f32 1.442695, %v4201_v44  ;;  %v2595_v48 = vpop.f32.mrb[44].mxu0  ;;  %vm1886_vm9 = vcmp.gt.f32.partialorder %v4201_v44, 0.0  ;;  %v1908_v23 = vadd.f32 1.0, %v4201_v44 }
 0x874   :  { %2982 = vpow2.f32 %v1936_v46  ;;  %v4208_v49 = vadd.f32 %v2595_v48, %v4191_v27  ;;  %v1803_v50 = vpop.f32.mrb[45].mxu0 }
 0x875   :  { %2984 = vpow2.f32 %v1934_v47  ;;  %v4211_v53 = vadd.f32 %v4191_v27, %v1803_v50 }
 0x876   :  { %v2975_v54 = vpop.eup %2974  ;;  %v1940_v56 = vmul.f32 1.442695, %v4208_v49  ;;  %vm1889_vm10 = vcmp.gt.f32.partialorder %v4208_v49, 0.0  ;;  %v1911_v4 = vadd.f32 1.0, %v4208_v49 }
 0x877   :  { %v2977_v57 = vpop.eup %2976  ;;  %v1971_v58 = vsel %vm1883_vm4, %v1905_v52, %v2975_v54  ;;  %v1938_v59 = vmul.f32 1.442695, %v4211_v53  ;;  %v2598_v60 = vpop.f32.mrb[46].mxu0  ;;  %vm1888_vm11 = vcmp.gt.f32.partialorder %v4211_v53, 0.0  ;;  %v1910_v43 = vadd.f32 1.0, %v4211_v53 }
 0x878   :  { %v1970_v62 = vsel %vm1882_vm5, %v1904_v55, %v2977_v57  ;;  %2986 = vpow2.f32 %v1940_v56  ;;  %v4218_v63 = vadd.f32 %v2598_v60, %v4191_v27  ;;  %v1813_v3 = vpop.f32.mrb[47].mxu0  ;;  %v2125_v8 = vmul.f32 %v2022_v28, %v1971_v58  ;;  %v2072_v55 = vpop.permute.xlu1 %2071 }
 0x879   :  { %2988 = vpow2.f32 %v1938_v59  ;;  %v4221_v6 = vadd.f32 %v4191_v27, %v1813_v3  ;;  %v2124_v14 = vmul.f32 %v2017_v32, %v1970_v62 }
 0x87a   :  { %v2979_v7 = vpop.eup %2978  ;;  %v1944_v10 = vmul.f32 1.442695, %v4218_v63  ;;  %v2167_v28 = vsel %vm960_vm3, %v2125_v8, 0.0  ;;  %vm1891_vm12 = vcmp.gt.f32.partialorder %v4218_v63, 0.0  ;;  %v1913_v62 = vadd.f32 1.0, %v4218_v63 }
 0x87b   :  { %v2981_v11 = vpop.eup %2980  ;;  %v1973_v15 = vsel %vm1885_vm6, %v1907_v5, %v2979_v7  ;;  %v2601_v17 = vpop.f32.mrb[48].mxu0  ;;  %v1942_v20 = vmul.f32 1.442695, %v4221_v6  ;;  %v2146_v32 = vsel %vm960_vm3, %v2124_v14, 0.0  ;;  %vm1890_vm13 = vcmp.gt.f32.partialorder %v4221_v6, 0.0 }
 0x87c   :  { %v2127_v18 = vmul.f32 %v2032_v36, %v1973_v15  ;;  %v1972_v19 = vsel %vm1884_vm7, %v1906_v9, %v2981_v11  ;;  %2990 = vpow2.f32 %v1944_v10  ;;  %v1823_v21 = vpop.f32.mrb[49].mxu0  ;;  %v4233_v24 = vadd.f32 %v2601_v17, %v4191_v27 }
 0x87d   :  { %v2126_v22 = vmul.f32 %v2027_v41, %v1972_v19  ;;  %2992 = vpow2.f32 %v1942_v20  ;;  %v4238_v30 = vadd.f32 %v4191_v27, %v1823_v21  ;;  %v2057_v41 = vpop.permute.xlu0 %2056  ;;  %v1912_v7 = vadd.f32 1.0, %v4221_v6  ;;  %v2082_v19 = vpop.permute.xlu1 %2081 }
 0x87e   :  { %v2983_v25 = vpop.eup %2982  ;;  %v2168_v29 = vsel %vm960_vm3, %v2127_v18, 0.0  ;;  %v1948_v37 = vmul.f32 1.442695, %v4233_v24  ;;  %vm1893_vm14 = vcmp.gt.f32.partialorder %v4233_v24, 0.0 }
 0x87f   :  { %v2985_v31 = vpop.eup %2984  ;;  %v2169_v33 = vadd.f32 %v2168_v29, %v2167_v28  ;;  %v2147_v13 = vsel %vm960_vm3, %v2126_v22, 0.0  ;;  %v1975_v34 = vsel %vm1887_vm8, %v1909_v16, %v2983_v25  ;;  %v2604_v35 = vpop.f32.mrb[50].mxu0  ;;  %v1946_v47 = vmul.f32 1.442695, %v4238_v30 }
 0x880   :  { %v2148_v36 = vadd.f32 %v2147_v13, %v2146_v32  ;;  %v2129_v2 = vmul.f32 %v4203_v45, %v1975_v34  ;;  %v1974_v40 = vsel %vm1886_vm9, %v1908_v23, %v2985_v31  ;;  %v1833_v39 = vpop.f32.mrb[51].mxu0  ;;  %v4254_v45 = vadd.f32 %v2604_v35, %v4191_v27 }
 0x881   :  { %v2128_v42 = vmul.f32 %v2037_v51, %v1974_v40  ;;  %v4257_v44 = vadd.f32 %v4191_v27, %v1833_v39  ;;  %2994 = vpow2.f32 %v1948_v37  ;;  %v2067_v53 = vpop.permute.xlu0 %2066  ;;  %v1915_v29 = vadd.f32 1.0, %v4233_v24 }
 0x882   :  { %v2987_v38 = vpop.eup %2986  ;;  %v2170_v46 = vsel %vm960_vm3, %v2129_v2, 0.0  ;;  %2996 = vpow2.f32 %v1946_v47  ;;  %v1952_v3 = vmul.f32 1.442695, %v4254_v45  ;;  %vm1892_vm15 = vcmp.gt.f32.partialorder %v4238_v30, 0.0 }
 0x883   :  { %v2989_v48 = vpop.eup %2988  ;;  %v2171_v50 = vadd.f32 %v2170_v46, %v2169_v33  ;;  %v2149_v51 = vsel %vm960_vm3, %v2128_v42, 0.0  ;;  %v1977_v52 = vsel %vm1889_vm10, %v1911_v4, %v2987_v38  ;;  %v2607_v54 = vpop.f32.mrb[52].mxu0  ;;  %v1914_v35 = vadd.f32 1.0, %v4238_v30 }
 0x884   :  { %v2150_v56 = vadd.f32 %v2149_v51, %v2148_v36  ;;  %v2131_v57 = vmul.f32 %v4215_v61, %v1977_v52  ;;  %v1976_v58 = vsel %vm1888_vm11, %v1910_v43, %v2989_v48  ;;  %v1843_v59 = vpop.f32.mrb[53].mxu0  ;;  %v1950_v61 = vmul.f32 1.442695, %v4257_v44  ;;  %v2092_v43 = vpop.permute.xlu1 %2091 }
 0x885   :  { %v2130_v60 = vmul.f32 %v2047_v12, %v1976_v58  ;;  %2998 = vpow2.f32 %v1952_v3  ;;  %v4274_v15 = vadd.f32 %v2607_v54, %v4191_v27  ;;  %v4277_v6 = vadd.f32 %v4191_v27, %v1843_v59  ;;  %v2077_v13 = vpop.permute.xlu0 %2076 }
 0x886   :  { %v2991_v49 = vpop.eup %2990  ;;  %v2172_v5 = vsel %vm960_vm3, %v2131_v57, 0.0  ;;  %3000 = vpow2.f32 %v1950_v61  ;;  %vm1895_vm1 = vcmp.gt.f32.partialorder %v4254_v45, 0.0  ;;  %v1917_v30 = vadd.f32 1.0, %v4254_v45 }
 0x887   :  { %v2173_v8 = vadd.f32 %v2172_v5, %v2171_v50  ;;  %v2151_v9 = vsel %vm960_vm3, %v2130_v60, 0.0  ;;  %v1979_v10 = vsel %vm1891_vm12, %v1913_v62, %v2991_v49  ;;  %v2610_v11 = vpop.f32.mrb[30].mxu1  ;;  %v2993_v12 = vpop.eup %2992  ;;  %v1956_v25 = vmul.f32 1.442695, %v4274_v15 }
 0x888   :  { %v2152_v63 = vadd.f32 %v2151_v9, %v2150_v56  ;;  %v2133_v14 = vmul.f32 %v2062_v26, %v1979_v10  ;;  %v1853_v16 = vpop.f32.mrb[31].mxu1  ;;  %v1978_v17 = vsel %vm1890_vm13, %v1912_v7, %v2993_v12  ;;  %v4280_v18 = vadd.f32 %v2610_v11, %v4191_v27 }
 0x889   :  { %v2132_v21 = vmul.f32 %v2057_v41, %v1978_v17  ;;  %v4284_v22 = vadd.f32 %v4191_v27, %v1853_v16  ;;  %v1954_v31 = vmul.f32 1.442695, %v4277_v6  ;;  %3002 = vpow2.f32 %v1956_v25  ;;  %v2087_v58 = vpop.permute.xlu0 %2086 }
 0x88a   :  { %v2174_v20 = vsel %vm960_vm3, %v2133_v14, 0.0  ;;  %v1960_v36 = vmul.f32 1.442695, %v4280_v18  ;;  %v1916_v50 = vadd.f32 1.0, %v4257_v44  ;;  %vm1894_vm2 = vcmp.gt.f32.partialorder %v4257_v44, 0.0 }
 0x88b   :  { %v2175_v23 = vadd.f32 %v2174_v20, %v2173_v8  ;;  %v2613_v26 = vpop.f32.mrb[32].mxu1  ;;  %v2153_v28 = vsel %vm960_vm3, %v2132_v21, 0.0  ;;  %v2995_v33 = vpop.eup %2994  ;;  %3004 = vpow2.f32 %v1954_v31  ;;  %v1958_v24 = vmul.f32 1.442695, %v4284_v22 }
 0x88c   :  { %v1863_v32 = vpop.f32.mrb[33].mxu1  ;;  %v2154_v34 = vadd.f32 %v2153_v28, %v2152_v63  ;;  %v2997_v2 = vpop.eup %2996  ;;  %v1981_v40 = vsel %vm1893_vm14, %v1915_v29, %v2995_v33  ;;  %3006 = vpow2.f32 %v1960_v36  ;;  %v4297_v41 = vadd.f32 %v2613_v26, %v4191_v27 }
 0x88d   :  { %v2135_v4 = vmul.f32 %v2072_v55, %v1981_v40  ;;  %v1980_v39 = vsel %vm1892_vm15, %v1914_v35, %v2997_v2  ;;  %3008 = vpow2.f32 %v1958_v24  ;;  %v4301_v38 = vadd.f32 %v4191_v27, %v1863_v32  ;;  %v2097_v17 = vpop.permute.xlu0 %2096 }
 0x88e   :  { %v2134_v37 = vmul.f32 %v2067_v53, %v1980_v39  ;;  %v1964_v51 = vmul.f32 1.442695, %v4297_v41  ;;  %v2102_v53 = vpop.permute.xlu1 %2101  ;;  %v1919_v44 = vadd.f32 1.0, %v4274_v15  ;;  %vm1897_vm4 = vcmp.gt.f32.partialorder %v4274_v15, 0.0 }
 0x88f   :  { %v2616_v42 = vpop.f32.mrb[34].mxu1  ;;  %v2999_v47 = vpop.eup %2998  ;;  %v2176_v48 = vsel %vm960_vm3, %v2135_v4, 0.0  ;;  %v1962_v49 = vmul.f32 1.442695, %v4301_v38  ;;  %v1918_v11 = vadd.f32 1.0, %v4277_v6  ;;  %vm1896_vm5 = vcmp.gt.f32.partialorder %v4277_v6, 0.0 }
 0x890   :  { %v1873_v46 = vpop.f32.mrb[35].mxu1  ;;  %v4307_v52 = vadd.f32 %v2616_v42, %v4191_v27  ;;  %v3001_v54 = vpop.eup %3000  ;;  %v2177_v55 = vadd.f32 %v2176_v48, %v2175_v23  ;;  %v2155_v56 = vsel %vm960_vm3, %v2134_v37, 0.0  ;;  %v1983_v57 = vsel %vm1895_vm1, %v1917_v30, %v2999_v47 }
 0x891   :  { %v2156_v59 = vadd.f32 %v2155_v56, %v2154_v34  ;;  %v2137_v60 = vmul.f32 %v2082_v19, %v1983_v57  ;;  %v1982_v62 = vsel %vm1894_vm2, %v1916_v50, %v3001_v54  ;;  %3010 = vpow2.f32 %v1964_v51  ;;  %v2107_v40 = vpop.permute.xlu0 %2106 }
 0x892   :  { %v2136_v3 = vmul.f32 %v2077_v13, %v1982_v62  ;;  %v1968_v7 = vmul.f32 1.442695, %v4307_v52  ;;  %v4317_v61 = vadd.f32 %v4191_v27, %v1873_v46  ;;  %3012 = vpow2.f32 %v1962_v49  ;;  %v2112_v29 = vpop.permute.xlu1 %2111  ;;  %v3022_v62 = vld [vmem:[%s4419_s14 + $0x8] sm:$0xff] }
 0x893   :  { %v2178_v5 = vsel %vm960_vm3, %v2137_v60, 0.0  ;;  %v3003_v9 = vpop.eup %3002  ;;  %v1921_v27 = vadd.f32 1.0, %v4280_v18  ;;  %vm1899_vm6 = vcmp.gt.f32.partialorder %v4280_v18, 0.0  ;;  %v1920_v21 = vadd.f32 1.0, %v4284_v22 }
 0x894   :  { %v2179_v45 = vadd.f32 %v2178_v5, %v2177_v55  ;;  %v2157_v8 = vsel %vm960_vm3, %v2136_v3, 0.0  ;;  %3014 = vpow2.f32 %v1968_v7  ;;  %v1985_v63 = vsel %vm1897_vm4, %v1919_v44, %v3003_v9 }
 0x895   :  { %v2158_v10 = vadd.f32 %v2157_v8, %v2156_v59  ;;  %v3005_v12 = vpop.eup %3004  ;;  %v1966_v14 = vmul.f32 1.442695, %v4317_v61  ;;  %v2139_v19 = vmul.f32 %v2092_v43, %v1985_v63  ;;  %vm1898_vm7 = vcmp.gt.f32.partialorder %v4284_v22, 0.0  ;;  %v2117_v56 = vpop.permute.xlu0 %2116 }
 0x896   :  { %v3007_v16 = vpop.eup %3006  ;;  %v1984_v20 = vsel %vm1896_vm5, %v1918_v11, %v3005_v12  ;;  %v1923_v33 = vadd.f32 1.0, %v4297_v41  ;;  %vm1901_vm8 = vcmp.gt.f32.partialorder %v4297_v41, 0.0  ;;  %v1922_v4 = vadd.f32 1.0, %v4301_v38  ;;  %v2122_v46 = vpop.permute.xlu1 %2121 }
 0x897   :  { %v3009_v15 = vpop.eup %3008  ;;  %v2138_v23 = vmul.f32 %v2087_v58, %v1984_v20  ;;  %v1987_v25 = vsel %vm1899_vm6, %v1921_v27, %v3007_v16  ;;  %3016 = vpow2.f32 %v1966_v14  ;;  %v2180_v6 = vsel %vm960_vm3, %v2139_v19, 0.0 }
 0x898   :  { %v2141_v26 = vmul.f32 %v2102_v53, %v1987_v25  ;;  %v1986_v28 = vsel %vm1898_vm7, %v1920_v21, %v3009_v15  ;;  %v2181_v13 = vadd.f32 %v2180_v6, %v2179_v45  ;;  %vm1900_vm9 = vcmp.gt.f32.partialorder %v4301_v38, 0.0 }
 0x899   :  { %v2159_v31 = vsel %vm960_vm3, %v2138_v23, 0.0  ;;  %v2140_v32 = vmul.f32 %v2097_v17, %v1986_v28  ;;  %v1925_v43 = vadd.f32 1.0, %v4307_v52  ;;  %vm1903_vm10 = vcmp.gt.f32.partialorder %v4307_v52, 0.0 }
 0x89a   :  { %v2182_v34 = vsel %vm960_vm3, %v2141_v26, 0.0  ;;  %v2160_v35 = vadd.f32 %v2159_v31, %v2158_v10  ;;  %v1924_v51 = vadd.f32 1.0, %v4317_v61  ;;  %vm1902_vm11 = vcmp.gt.f32.partialorder %v4317_v61, 0.0  ;;  %v3023_v61 = vld [vmem:[%s4419_s14] sm:$0xff]  ;;  %s3248_s14 = smov [#allocation16]  }
 0x89b   :  { %v3011_v18 = vpop.eup %3010  ;;  %v2183_v22 = vadd.f32 %v2182_v34, %v2181_v13  ;;  %v2161_v2 = vsel %vm960_vm3, %v2140_v32, 0.0  ;;  %v2198_v8 = vadd.s32 8, %v3686_v1  ;;  %v2200_v44 = vand.u32 127, %v182_v0  ;;  %s2229_s9 = sshll.u32 %s3248_s14, 4  ;;  %s2230_s9 = int_to_ptr.vmem [resolvable:$true] %s2229_s9 }
 0x89c   :  { %v1989_v36 = vsel %vm1901_vm8, %v1923_v33, %v3011_v18  ;;  %v2162_v39 = vadd.f32 %v2161_v2, %v2160_v35  ;;  %v3013_v42 = vpop.eup %3012  ;;  %s3200_s28 = scalar_lea.vmem %s2230_s9, 16  ;;  %s3204_s25 = scalar_lea.vmem %s2230_s9, 32 }
 0x89d   :  { %v2143_v24 = vmul.f32 %v2112_v29, %v1989_v36  ;;  %v1988_v30 = vsel %vm1900_vm9, %v1922_v4, %v3013_v42  ;;  %vm2202_vm12 = vcmp.eq.s32.totalorder %v2198_v8, %v2200_v44  ;;  %vm2201_vm13 = vcmp.eq.s32.totalorder %v3686_v1, %v2200_v44  ;;  %p3201_p8 = scmp.ne.s32.totalorder %s2230_s9, %s3200_s28  ;;  %p3205_p9 = scmp.lt.s32.totalorder %s2230_s9, %s2230_s9 }
 0x89e   :  { %v3015_v37 = vpop.eup %3014  ;;  %v2142_v47 = vmul.f32 %v2107_v40, %v1988_v30  ;;  %p3206_p10 = scmp.lt.s32.totalorder %s3204_s25, %s3200_s28 }
 0x89f   :  { %v2184_v41 = vsel %vm960_vm3, %v2143_v24, 0.0  ;;  %v1991_v48 = vsel %vm1903_vm10, %v1925_v43, %v3015_v37 }
 0x8a0   :  { %v2185_v50 = vadd.f32 %v2184_v41, %v2183_v22  ;;  %v2145_v54 = vmul.f32 %v2122_v46, %v1991_v48  ;;  %v2163_v38 = vsel %vm960_vm3, %v2142_v47, 0.0  ;;  %p3207_p11 = por %p3206_p10, %p3205_p9 }
 0x8a1   :  { %v3017_v55 = vpop.eup %3016  ;;  %v2164_v59 = vadd.f32 %v2163_v38, %v2162_v39 }
 0x8a2   :  { %v1990_v57 = vsel %vm1902_vm11, %v1924_v51, %v3017_v55  ;;  %v2186_v58 = vsel %vm960_vm3, %v2145_v54, 0.0  ;;  %p3208_p12 = pnand %p3207_p11, %p3201_p8 }
 0x8a3   :  { %v2187_v52 = vadd.f32 %v2186_v58, %v2185_v50  ;;  %v2144_v60 = vmul.f32 %v2117_v56, %v1990_v57 }
 0x8a5   :  { %v2189_v3 = vmul.f32 %v3022_v62, %v2187_v52  ;;  %v2165_v49 = vsel %vm960_vm3, %v2144_v60, 0.0 }
 0x8a6   :  { %v2166_v5 = vadd.f32 %v2165_v49, %v2164_v59 }
 0x8a7   :  { %v2193_v7 = vsel %vm960_vm3, %v2189_v3, 0.0 }
 0x8a8   :  { %2194 = vadd.xlane.f32.xlu1 %v2193_v7  ;;  %v2188_v53 = vmul.f32 %v3023_v61, %v2166_v5 }
 0x8aa   :  { %v2190_v45 = vsel %vm960_vm3, %v2188_v53, 0.0  ;;  %vm2221_vm3 = vcmask 122880  }
 0x8ab   :  { %2191 = vadd.xlane.f32.xlu0 %v2190_v45 }
 0x935   :  { %v2195_v9 = vpop.xlane.xlu1 %2194 }
 0x936   :  { %v2204_v10 = vsel %vm2202_vm12, %v2195_v9, 0.0 }
 0x937   :  { %v2206_v11 = vsel %vm192_vm0, %v2204_v10, 0.0 }
 0x938   :  { %v2192_v12 = vpop.xlane.xlu0 %2191 }
 0x939   :  { %v2203_v63 = vsel %vm2201_vm13, %v2192_v12, 0.0 }
 0x93a   :  { %v2205_v27 = vsel %vm192_vm0, %v2203_v63, 0.0 }
 0x93b   :  { %v2207_v14 = vadd.f32 %v2206_v11, %v2205_v27 }
 0x93d   :  { %v2208_v16 = vrot.slane %v2207_v14, 4 }
 0x93f   :  { %v2209_v17 = vadd.f32 %v2208_v16, %v2207_v14 }
 0x941   :  { %v2210_v19 = vrot.slane %v2209_v17, 2 }
 0x943   :  { %v2211_v20 = vadd.f32 %v2210_v19, %v2209_v17 }
 0x945   :  { %v2212_v21 = vrot.slane %v2211_v20, 1 }
 0x947   :  { %v2213_v15 = vadd.f32 %v2212_v21, %v2211_v20 }
 0x949   :  { %v2214_v23 = vsub.f32 0.0, %v2213_v15 }
 0x94b   :  { %v2215_v0 = vmul.f32 1.442695, %v2214_v23 }
 0x94d   :  { %3018 = vpow2.f32 %v2215_v0 }
 0x957   :  { %v3019_v25 = vpop.eup %3018 }
 0x958   :  { %v2217_v6 = vadd.f32 1.0, %v3019_v25 }
 0x95a   :  { %3020 = vrcp.f32 %v2217_v6 }
 0x964   :  { %v3021_v1 = vpop.eup %3020 }
 0x965   :  { %vm2219_vm14 = vcmp.ne.f32.partialorder %v3021_v1, %v3021_v1 }
 0x966   :  { %v2220_v26 = vsel %vm2219_vm14, 0.0, %v3021_v1 }
 0x967   :  { %2222 = vst.msk [vmem:[#allocation16] sm:$0x1] %vm2221_vm3, %v2220_v26 }
 0x968   :  { %3211 = shalt.err (!%p3208_p12)
}
 0x969   :  { %s4420_s8 = sld [smem:[#allocation31_spill]] }
 0x96f   :  { %s3212_s5 = scalar_lea.hbm %s4420_s8, 16 }
 0x970   :  { %p3213_p13 = scmp.ne.s32.totalorder %s4420_s8, %s3212_s5  ;;  %p3216_p0 = scmp.lt.u32.totalorder %s3212_s5, %s4420_s8 }
 0x972   :  { %p3218_p1 = pnand %p3216_p0, %p3213_p13 }
 0x974   :  { %3221 = shalt.err (!%p3218_p1)
}
 0x975   :  { %2232 = dma.vmem_to_hbm [thread:$0]  %s2230_s9, 16, %s4420_s8, [#allocation4]  }
 0x976   :  { %3232 = dma.done.wait [#allocation4], 16  }
 0x977   :  { %3233 = vsyncadd [#allocation4], 4294967280 }
 0x978   :  { %2236 = vsyncpa [#allocation3], 1 }
 0x979   :  { %2237 = vsyncpa [#allocation6], 1 }
 0x97a   :  { %2238 = vsyncpa [#allocation9], 1 }
 0x97b   :  { %2239 = vsyncpa [#allocation12], 1 }
 0x97c   :  { %2240 = vsyncpa [#allocation15], 1 }
 0x97d   :  { %2241 = vsyncpa [#allocation4], 1 }

</bundles_post_ra>
